<compile_context>
chip_gen: v5e
topology: v5e:2x2
jax: 0.10.0
libtpu: 0.0.40
codegen_flags: <defaults>
</compile_context>

<pallas_src>
import functools

import numpy as np
import jax
import jax.numpy as jnp
from jax.experimental import pallas as pl
from jax.experimental.pallas import tpu as pltpu


# ----------------------------- Pallas kernels ------------------------------

def _down_kernel(ph_ref, wd_ref, extra_ref, inner_ref, *, cin, ho, wq, n_extra):
    """LeakyReLU(0.2) + 4x4/stride-2 conv from phase-split padded input.

    ph_ref block: (1, 4*cin, Hq*Wq+1) f32  -- phases flattened row-major.
    Output pixel q = ho_idx*Wq + wo_idx (column wo_idx==Wo is a sentinel).
    """
    ph = ph_ref[0]                                      # (4*cin, Hq*Wq+1) f32
    ph = jnp.where(ph > 0, ph, 0.2 * ph)                # LeakyReLU in f32
    wd = wd_ref[...]                                    # (Cdown, 16*cin) bf16
    width = ho * wq
    cdown = wd.shape[0]
    acc = jnp.zeros((cdown, width), jnp.float32)
    for kh in range(4):
        a, pa = kh // 2, kh % 2
        for kw in range(4):
            b, pb = kw // 2, kw % 2
            phase = pa * 2 + pb
            off = a * wq + b
            tap = kh * 4 + kw
            slab = ph[phase * cin:(phase + 1) * cin,
                      off:off + width].astype(jnp.bfloat16)      # (cin, width)
            wk = wd[:, tap * cin:(tap + 1) * cin]                # (Cdown, cin)
            acc = acc + jnp.dot(wk, slab, preferred_element_type=jnp.float32)
    extra_ref[0] = acc[:n_extra, :]
    inner_ref[0] = acc[n_extra:, :]


def _upsample_kernel(x_ref, awtp_ref, ahp_ref, u_ref, *, c_inner, ho, wo):
    """ReLU + separable bilinear x2 (align_corners=True) with built-in zero pad."""
    x = x_ref[0][:, :, :wo]                             # (Cinner, Ho, Wo) f32
    x = jnp.maximum(x, 0)                               # ReLU in f32
    wp2 = awtp_ref.shape[1]                             # Wout + 2
    hp3 = ahp_ref.shape[0]                              # Hout + 3
    # W-direction: (Cinner*Ho, Wo) @ (Wo, Wout+2)  (zero first/last columns)
    z = jnp.dot(x.reshape(c_inner * ho, wo).astype(jnp.bfloat16), awtp_ref[...],
                preferred_element_type=jnp.float32)     # (Cinner*Ho, Wp2)
    z = z.reshape(c_inner, ho, wp2).astype(jnp.bfloat16)
    # H-direction: channel-batched matmul with zero-padded row matrix.
    ahb = jnp.broadcast_to(ahp_ref[...], (c_inner, hp3, ho))
    u = jnp.einsum('coh,chw->cow', ahb, z,
                   preferred_element_type=jnp.float32)  # (Cinner, Hp3, Wp2)
    u_ref[0] = u.astype(jnp.bfloat16)


def _upconv_stats_kernel(uf_ref, w3_ref, mask_ref, y_ref, stats_ref,
                         *, c_inner, wp2, hout):
    """3x3/pad-1 conv on the flattened padded map + BN sum/sumsq accumulation.

    Output pixel q = h*Wp2 + w (columns w in {Wout, Wout+1} are sentinels and
    masked out of the statistics).
    """
    u = uf_ref[0]                                       # (Cinner, (Hout+3)*Wp2) bf16
    w3 = w3_ref[...]                                    # (outer_nc, 9*Cinner) bf16
    width = hout * wp2
    outer = w3.shape[0]
    y = jnp.zeros((outer, width), jnp.float32)
    for kh in range(3):
        for kw in range(3):
            off = kh * wp2 + kw
            tap = kh * 3 + kw
            slab = u[:, off:off + width]                         # (Cinner, width)
            wk = w3[:, tap * c_inner:(tap + 1) * c_inner]        # (outer, Cinner)
            y = y + jnp.dot(wk, slab, preferred_element_type=jnp.float32)
    y_ref[0] = y

    m = mask_ref[...]                                   # (1, width) f32 valid mask
    ym = y * m

    @pl.when(pl.program_id(0) == 0)
    def _():
        stats_ref[...] = jnp.zeros_like(stats_ref)

    stats_ref[:, 0:1] += jnp.sum(ym, axis=1, keepdims=True)
    stats_ref[:, 1:2] += jnp.sum(ym * y, axis=1, keepdims=True)


def _bn_apply_kernel(y_ref, scale_ref, shift_ref, o_ref, *, n_ch):
    """Per-channel affine (BatchNorm) with scale/shift scalars read from SMEM."""
    y = y_ref[0]                                        # (outer_nc, width) f32
    for c in range(n_ch):
        o_ref[0, c:c + 1, :] = y[c:c + 1, :] * scale_ref[c] + shift_ref[c]


# ------------------------------- JAX glue ----------------------------------

def _bilinear_matrix(in_size, out_size):
    """PyTorch Upsample(mode='bilinear', align_corners=True) 1-D weights."""
    A = np.zeros((out_size, in_size), dtype=np.float32)
    if out_size == 1 or in_size == 1:
        A[:, 0] = 1.0
        return A
    scale = (in_size - 1) / (out_size - 1)
    for o in range(out_size):
        src = o * scale
        lo = int(np.floor(src))
        hi = min(lo + 1, in_size - 1)
        frac = src - lo
        A[o, lo] += 1.0 - frac
        A[o, hi] += frac
    return A


def _cparams(semantics):
    return pltpu.CompilerParams(dimension_semantics=semantics,
                                vmem_limit_bytes=32 * 1024 * 1024)


def inner_unet_block_forward(x_nchw, params, extra_size):
    N, Cin, H, W = x_nchw.shape
    assert H % 2 == 0 and W % 2 == 0, "even spatial sizes expected"
    Ho, Wo = H // 2, W // 2
    Hq, Wq = Ho + 1, Wo + 1
    Hout, Wout = H, W
    Wp2, Hp3 = Wout + 2, Hout + 3

    w1 = params["down_w"]                   # (Cdown, Cin, 4, 4)
    w3 = params["up_w"]                     # (outer_nc, Cinner, 3, 3)
    Cdown = w1.shape[0]
    n_extra = 2 * extra_size
    Cinner = Cdown - n_extra
    outer_nc = w3.shape[0]
    f32, bf16 = jnp.float32, jnp.bfloat16

    # ---- down path: phase-split padded input (no k^2 im2col HBM blowup) ----
    xp = jnp.pad(x_nchw, ((0, 0), (0, 0), (1, 1), (1, 1)))
    ph = xp.reshape(N, Cin, Hq, 2, Wq, 2)
    ph = jnp.transpose(ph, (0, 3, 5, 1, 2, 4)).reshape(N, 4 * Cin, Hq * Wq)
    ph = jnp.pad(ph, ((0, 0), (0, 0), (0, 1)))           # +1 sentinel column
    Lq = Hq * Wq + 1

    wd = jnp.transpose(w1, (0, 2, 3, 1)).reshape(Cdown, 16 * Cin).astype(bf16)

    down = pl.pallas_call(
        functools.partial(_down_kernel, cin=Cin, ho=Ho, wq=Wq, n_extra=n_extra),
        grid=(N,),
        in_specs=[pl.BlockSpec((1, 4 * Cin, Lq), lambda n: (n, 0, 0)),
                  pl.BlockSpec((Cdown, 16 * Cin), lambda n: (0, 0))],
        out_specs=[pl.BlockSpec((1, n_extra, Ho * Wq), lambda n: (n, 0, 0)),
                   pl.BlockSpec((1, Cinner, Ho * Wq), lambda n: (n, 0, 0))],
        out_shape=[jax.ShapeDtypeStruct((N, n_extra, Ho * Wq), f32),
                   jax.ShapeDtypeStruct((N, Cinner, Ho * Wq), f32)],
        compiler_params=_cparams(("parallel",)),
    )
    extra_flat, inner_flat = down(ph, wd)

    # ---- up path 1/3: ReLU + separable bilinear x2 upsample (fused) ----
    ahp = np.zeros((Hp3, Ho), np.float32)
    ahp[1:Hout + 1] = _bilinear_matrix(Ho, Hout)          # zero pad rows 0, H+1, H+2
    awtp = np.zeros((Wo, Wp2), np.float32)
    awtp[:, 1:Wout + 1] = _bilinear_matrix(Wo, Wout).T    # zero pad cols 0, W+1
    ahp = jnp.asarray(ahp, dtype=bf16)
    awtp = jnp.asarray(awtp, dtype=bf16)

    inner4 = inner_flat.reshape(N, Cinner, Ho, Wq)        # contiguous (free) reshape
    upsample = pl.pallas_call(
        functools.partial(_upsample_kernel, c_inner=Cinner, ho=Ho, wo=Wo),
        grid=(N,),
        in_specs=[pl.BlockSpec((1, Cinner, Ho, Wq), lambda n: (n, 0, 0, 0)),
                  pl.BlockSpec((Wo, Wp2), lambda n: (0, 0)),
                  pl.BlockSpec((Hp3, Ho), lambda n: (0, 0))],
        out_specs=pl.BlockSpec((1, Cinner, Hp3, Wp2), lambda n: (n, 0, 0, 0)),
        out_shape=jax.ShapeDtypeStruct((N, Cinner, Hp3, Wp2), bf16),
        compiler_params=_cparams(("parallel",)),
    )
    u = upsample(inner4, awtp, ahp)

    # ---- up path 2/3: 3x3 conv (lane-dense) + BN sum/sumsq reduction ----
    w3m = jnp.transpose(w3, (0, 2, 3, 1)).reshape(outer_nc, 9 * Cinner).astype(bf16)
    mask = (np.arange(Hout * Wp2) % Wp2 < Wout).astype(np.float32).reshape(1, -1)
    mask = jnp.asarray(mask)
    uf = u.reshape(N, Cinner, Hp3 * Wp2)                  # contiguous (free) reshape

    upconv = pl.pallas_call(
        functools.partial(_upconv_stats_kernel, c_inner=Cinner, wp2=Wp2, hout=Hout),
        grid=(N,),
        in_specs=[pl.BlockSpec((1, Cinner, Hp3 * Wp2), lambda n: (n, 0, 0)),
                  pl.BlockSpec((outer_nc, 9 * Cinner), lambda n: (0, 0)),
                  pl.BlockSpec((1, Hout * Wp2), lambda n: (0, 0))],
        out_specs=[pl.BlockSpec((1, outer_nc, Hout * Wp2), lambda n: (n, 0, 0)),
                   pl.BlockSpec((outer_nc, 2), lambda n: (0, 0))],
        out_shape=[jax.ShapeDtypeStruct((N, outer_nc, Hout * Wp2), f32),
                   jax.ShapeDtypeStruct((outer_nc, 2), f32)],
        compiler_params=_cparams(("arbitrary",)),          # cross-batch reduction
    )
    y_raw, stats = upconv(uf, w3m, mask)

    # ---- BN batch statistics -> per-channel scale/shift ----
    cnt = float(N * Hout * Wout)
    mean = stats[:, 0] / cnt
    var = jnp.maximum(stats[:, 1] / cnt - mean * mean, 0.0)
    rstd = jax.lax.rsqrt(var + 1e-5)
    scale = (params["bn_gamma"] * rstd).astype(f32)
    shift = (params["bn_beta"] - mean * params["bn_gamma"] * rstd).astype(f32)
    # TODO(synk): BatchNorm running-stats update is a training-time side effect
    # (does not affect this forward's output) and is not materialized here.

    # ---- up path 3/3: apply BN affine (scale/shift scalars in SMEM) ----
    bn_apply = pl.pallas_call(
        functools.partial(_bn_apply_kernel, n_ch=outer_nc),
        grid=(N,),
        in_specs=[pl.BlockSpec((1, outer_nc, Hout * Wp2), lambda n: (n, 0, 0)),
                  pl.BlockSpec(memory_space=pltpu.MemorySpace.SMEM),
                  pl.BlockSpec(memory_space=pltpu.MemorySpace.SMEM)],
        out_specs=pl.BlockSpec((1, outer_nc, Hout * Wp2), lambda n: (n, 0, 0)),
        out_shape=jax.ShapeDtypeStruct((N, outer_nc, Hout * Wp2), f32),
        compiler_params=_cparams(("parallel",)),
    )
    up_flat = bn_apply(y_raw, scale, shift)

    # ---- outputs: strip sentinel columns, back to NCHW ----
    up_nchw = up_flat.reshape(N, outer_nc, Hout, Wp2)[:, :, :, :Wout]
    extra_nchw = extra_flat.reshape(N, n_extra, Ho, Wq)[:, :, :, :Wo]
    out = jnp.concatenate([x_nchw, up_nchw], axis=1)
    return out, (extra_nchw,)


# --------------------------------- main -------------------------------------

if __name__ == "__main__":
    key = jax.random.PRNGKey(0)
    N, outer_nc, H, W = 2, 4, 16, 16
    inner_input_nc = 8            # inner_output_nc == inner_input_nc
    extra_size = 4
    input_nc = outer_nc           # input_nc defaults to outer_nc
    Cdown = inner_input_nc + 2 * extra_size   # inner_input_nc += extra_size * C

    kx, kd, ku = jax.random.split(key, 3)
    x = jax.random.normal(kx, (N, input_nc, H, W), dtype=jnp.float32)
    params = {
        "down_w": 0.1 * jax.random.normal(kd, (Cdown, input_nc, 4, 4), jnp.float32),
        "up_w": 0.1 * jax.random.normal(ku, (outer_nc, inner_input_nc, 3, 3), jnp.float32),
        "bn_gamma": jnp.ones((outer_nc,), jnp.float32),   # BatchNorm affine init
        "bn_beta": jnp.zeros((outer_nc,), jnp.float32),
    }

    fwd = jax.jit(lambda xx: inner_unet_block_forward(xx, params, extra_size))
    out, (extra_blk,) = fwd(x)
    jax.block_until_ready(out)
    jax.block_until_ready(extra_blk)

    assert out.shape == (N, 2 * outer_nc, H, W), out.shape
    assert extra_blk.shape == (N, 2 * extra_size, H // 2, W // 2), extra_blk.shape
    assert bool(jnp.all(jnp.isfinite(out))) and bool(jnp.all(jnp.isfinite(extra_blk)))
    print("KERNEL_OK")
</pallas_src>

<mosaic_0001>
module attributes {stable_mosaic.version = 11 : i64} {
  func.func @_down_kernel(%arg0: i32, %arg1: memref<1x16x82xf32, #tpu.memory_space<vmem>>, %arg2: memref<16x64xbf16, #tpu.memory_space<vmem>>, %arg3: memref<1x8x72xf32, #tpu.memory_space<vmem>>, %arg4: memref<1x8x72xf32, #tpu.memory_space<vmem>>) attributes {dimension_semantics = [#tpu.dimension_semantics<parallel>], iteration_bounds = array<i64: 2>, scalar_prefetch = 0 : i64, scratch_operands = 0 : i64, tpu.core_type = #tpu.core_type<tc>, window_params = [{transform_indices = @transform_0, window_bounds = array<i64: 1, 16, 82>}, {pipeline_mode = #tpu.pipeline_mode<synchronous>, transform_indices = @transform_1, window_bounds = array<i64: 16, 64>}, {transform_indices = @transform_2, window_bounds = array<i64: 1, 8, 72>}, {transform_indices = @transform_3, window_bounds = array<i64: 1, 8, 72>}]} {
    %c0 = arith.constant 0 : index
    %c0_0 = arith.constant 0 : index
    %c0_1 = arith.constant 0 : index
    %0 = vector.load %arg1[%c0, %c0_0, %c0_1] : memref<1x16x82xf32, #tpu.memory_space<vmem>>, vector<1x16x82xf32>
    %1 = vector.shape_cast %0 : vector<1x16x82xf32> to vector<16x82xf32>
    %cst = arith.constant 0.000000e+00 : f32
    %2 = vector.broadcast %cst : f32 to vector<16x82xf32>
    %3 = arith.cmpf ogt, %1, %2 : vector<16x82xf32>
    %cst_2 = arith.constant 2.000000e-01 : f32
    %4 = vector.broadcast %cst_2 : f32 to vector<16x82xf32>
    %5 = arith.mulf %4, %1 : vector<16x82xf32>
    %6 = arith.select %3, %1, %5 : vector<16x82xi1>, vector<16x82xf32>
    %c0_3 = arith.constant 0 : index
    %c0_4 = arith.constant 0 : index
    %7 = vector.load %arg2[%c0_3, %c0_4] : memref<16x64xbf16, #tpu.memory_space<vmem>>, vector<16x64xbf16>
    %cst_5 = arith.constant 0.000000e+00 : f32
    %8 = vector.broadcast %cst_5 : f32 to vector<16x72xf32>
    %9 = vector.extract_strided_slice %6 {offsets = [0, 0], sizes = [4, 72], strides = [1, 1]} : vector<16x82xf32> to vector<4x72xf32>
    %10 = arith.truncf %9 : vector<4x72xf32> to vector<4x72xbf16>
    %11 = vector.extract_strided_slice %7 {offsets = [0, 0], sizes = [16, 4], strides = [1, 1]} : vector<16x64xbf16> to vector<16x4xbf16>
    %cst_6 = arith.constant dense<0.000000e+00> : vector<16x72xf32>
    %12 = tpu.matmul %11, %10, %cst_6 {dimension_numbers = #tpu.dot_dimension_numbers<[1], [0], [0], [1], [0, 0, 1, 1], [], []>} : vector<16x4xbf16>, vector<4x72xbf16>, vector<16x72xf32> -> vector<16x72xf32>
    %13 = arith.addf %8, %12 : vector<16x72xf32>
    %14 = vector.extract_strided_slice %6 {offsets = [4, 0], sizes = [4, 72], strides = [1, 1]} : vector<16x82xf32> to vector<4x72xf32>
    %15 = arith.truncf %14 : vector<4x72xf32> to vector<4x72xbf16>
    %16 = vector.extract_strided_slice %7 {offsets = [0, 4], sizes = [16, 4], strides = [1, 1]} : vector<16x64xbf16> to vector<16x4xbf16>
    %cst_7 = arith.constant dense<0.000000e+00> : vector<16x72xf32>
    %17 = tpu.matmul %16, %15, %cst_7 {dimension_numbers = #tpu.dot_dimension_numbers<[1], [0], [0], [1], [0, 0, 1, 1], [], []>} : vector<16x4xbf16>, vector<4x72xbf16>, vector<16x72xf32> -> vector<16x72xf32>
    %18 = arith.addf %13, %17 : vector<16x72xf32>
    %19 = vector.extract_strided_slice %6 {offsets = [0, 1], sizes = [4, 72], strides = [1, 1]} : vector<16x82xf32> to vector<4x72xf32>
    %20 = arith.truncf %19 : vector<4x72xf32> to vector<4x72xbf16>
    %21 = vector.extract_strided_slice %7 {offsets = [0, 8], sizes = [16, 4], strides = [1, 1]} : vector<16x64xbf16> to vector<16x4xbf16>
    %cst_8 = arith.constant dense<0.000000e+00> : vector<16x72xf32>
    %22 = tpu.matmul %21, %20, %cst_8 {dimension_numbers = #tpu.dot_dimension_numbers<[1], [0], [0], [1], [0, 0, 1, 1], [], []>} : vector<16x4xbf16>, vector<4x72xbf16>, vector<16x72xf32> -> vector<16x72xf32>
    %23 = arith.addf %18, %22 : vector<16x72xf32>
    %24 = vector.extract_strided_slice %6 {offsets = [4, 1], sizes = [4, 72], strides = [1, 1]} : vector<16x82xf32> to vector<4x72xf32>
    %25 = arith.truncf %24 : vector<4x72xf32> to vector<4x72xbf16>
    %26 = vector.extract_strided_slice %7 {offsets = [0, 12], sizes = [16, 4], strides = [1, 1]} : vector<16x64xbf16> to vector<16x4xbf16>
    %cst_9 = arith.constant dense<0.000000e+00> : vector<16x72xf32>
    %27 = tpu.matmul %26, %25, %cst_9 {dimension_numbers = #tpu.dot_dimension_numbers<[1], [0], [0], [1], [0, 0, 1, 1], [], []>} : vector<16x4xbf16>, vector<4x72xbf16>, vector<16x72xf32> -> vector<16x72xf32>
    %28 = arith.addf %23, %27 : vector<16x72xf32>
    %29 = vector.extract_strided_slice %6 {offsets = [8, 0], sizes = [4, 72], strides = [1, 1]} : vector<16x82xf32> to vector<4x72xf32>
    %30 = arith.truncf %29 : vector<4x72xf32> to vector<4x72xbf16>
    %31 = vector.extract_strided_slice %7 {offsets = [0, 16], sizes = [16, 4], strides = [1, 1]} : vector<16x64xbf16> to vector<16x4xbf16>
    %cst_10 = arith.constant dense<0.000000e+00> : vector<16x72xf32>
    %32 = tpu.matmul %31, %30, %cst_10 {dimension_numbers = #tpu.dot_dimension_numbers<[1], [0], [0], [1], [0, 0, 1, 1], [], []>} : vector<16x4xbf16>, vector<4x72xbf16>, vector<16x72xf32> -> vector<16x72xf32>
    %33 = arith.addf %28, %32 : vector<16x72xf32>
    %34 = vector.extract_strided_slice %6 {offsets = [12, 0], sizes = [4, 72], strides = [1, 1]} : vector<16x82xf32> to vector<4x72xf32>
    %35 = arith.truncf %34 : vector<4x72xf32> to vector<4x72xbf16>
    %36 = vector.extract_strided_slice %7 {offsets = [0, 20], sizes = [16, 4], strides = [1, 1]} : vector<16x64xbf16> to vector<16x4xbf16>
    %cst_11 = arith.constant dense<0.000000e+00> : vector<16x72xf32>
    %37 = tpu.matmul %36, %35, %cst_11 {dimension_numbers = #tpu.dot_dimension_numbers<[1], [0], [0], [1], [0, 0, 1, 1], [], []>} : vector<16x4xbf16>, vector<4x72xbf16>, vector<16x72xf32> -> vector<16x72xf32>
    %38 = arith.addf %33, %37 : vector<16x72xf32>
    %39 = vector.extract_strided_slice %6 {offsets = [8, 1], sizes = [4, 72], strides = [1, 1]} : vector<16x82xf32> to vector<4x72xf32>
    %40 = arith.truncf %39 : vector<4x72xf32> to vector<4x72xbf16>
    %41 = vector.extract_strided_slice %7 {offsets = [0, 24], sizes = [16, 4], strides = [1, 1]} : vector<16x64xbf16> to vector<16x4xbf16>
    %cst_12 = arith.constant dense<0.000000e+00> : vector<16x72xf32>
    %42 = tpu.matmul %41, %40, %cst_12 {dimension_numbers = #tpu.dot_dimension_numbers<[1], [0], [0], [1], [0, 0, 1, 1], [], []>} : vector<16x4xbf16>, vector<4x72xbf16>, vector<16x72xf32> -> vector<16x72xf32>
    %43 = arith.addf %38, %42 : vector<16x72xf32>
    %44 = vector.extract_strided_slice %6 {offsets = [12, 1], sizes = [4, 72], strides = [1, 1]} : vector<16x82xf32> to vector<4x72xf32>
    %45 = arith.truncf %44 : vector<4x72xf32> to vector<4x72xbf16>
    %46 = vector.extract_strided_slice %7 {offsets = [0, 28], sizes = [16, 4], strides = [1, 1]} : vector<16x64xbf16> to vector<16x4xbf16>
    %cst_13 = arith.constant dense<0.000000e+00> : vector<16x72xf32>
    %47 = tpu.matmul %46, %45, %cst_13 {dimension_numbers = #tpu.dot_dimension_numbers<[1], [0], [0], [1], [0, 0, 1, 1], [], []>} : vector<16x4xbf16>, vector<4x72xbf16>, vector<16x72xf32> -> vector<16x72xf32>
    %48 = arith.addf %43, %47 : vector<16x72xf32>
    %49 = vector.extract_strided_slice %6 {offsets = [0, 9], sizes = [4, 72], strides = [1, 1]} : vector<16x82xf32> to vector<4x72xf32>
    %50 = arith.truncf %49 : vector<4x72xf32> to vector<4x72xbf16>
    %51 = vector.extract_strided_slice %7 {offsets = [0, 32], sizes = [16, 4], strides = [1, 1]} : vector<16x64xbf16> to vector<16x4xbf16>
    %cst_14 = arith.constant dense<0.000000e+00> : vector<16x72xf32>
    %52 = tpu.matmul %51, %50, %cst_14 {dimension_numbers = #tpu.dot_dimension_numbers<[1], [0], [0], [1], [0, 0, 1, 1], [], []>} : vector<16x4xbf16>, vector<4x72xbf16>, vector<16x72xf32> -> vector<16x72xf32>
    %53 = arith.addf %48, %52 : vector<16x72xf32>
    %54 = vector.extract_strided_slice %6 {offsets = [4, 9], sizes = [4, 72], strides = [1, 1]} : vector<16x82xf32> to vector<4x72xf32>
    %55 = arith.truncf %54 : vector<4x72xf32> to vector<4x72xbf16>
    %56 = vector.extract_strided_slice %7 {offsets = [0, 36], sizes = [16, 4], strides = [1, 1]} : vector<16x64xbf16> to vector<16x4xbf16>
    %cst_15 = arith.constant dense<0.000000e+00> : vector<16x72xf32>
    %57 = tpu.matmul %56, %55, %cst_15 {dimension_numbers = #tpu.dot_dimension_numbers<[1], [0], [0], [1], [0, 0, 1, 1], [], []>} : vector<16x4xbf16>, vector<4x72xbf16>, vector<16x72xf32> -> vector<16x72xf32>
    %58 = arith.addf %53, %57 : vector<16x72xf32>
    %59 = vector.extract_strided_slice %6 {offsets = [0, 10], sizes = [4, 72], strides = [1, 1]} : vector<16x82xf32> to vector<4x72xf32>
    %60 = arith.truncf %59 : vector<4x72xf32> to vector<4x72xbf16>
    %61 = vector.extract_strided_slice %7 {offsets = [0, 40], sizes = [16, 4], strides = [1, 1]} : vector<16x64xbf16> to vector<16x4xbf16>
    %cst_16 = arith.constant dense<0.000000e+00> : vector<16x72xf32>
    %62 = tpu.matmul %61, %60, %cst_16 {dimension_numbers = #tpu.dot_dimension_numbers<[1], [0], [0], [1], [0, 0, 1, 1], [], []>} : vector<16x4xbf16>, vector<4x72xbf16>, vector<16x72xf32> -> vector<16x72xf32>
    %63 = arith.addf %58, %62 : vector<16x72xf32>
    %64 = vector.extract_strided_slice %6 {offsets = [4, 10], sizes = [4, 72], strides = [1, 1]} : vector<16x82xf32> to vector<4x72xf32>
    %65 = arith.truncf %64 : vector<4x72xf32> to vector<4x72xbf16>
    %66 = vector.extract_strided_slice %7 {offsets = [0, 44], sizes = [16, 4], strides = [1, 1]} : vector<16x64xbf16> to vector<16x4xbf16>
    %cst_17 = arith.constant dense<0.000000e+00> : vector<16x72xf32>
    %67 = tpu.matmul %66, %65, %cst_17 {dimension_numbers = #tpu.dot_dimension_numbers<[1], [0], [0], [1], [0, 0, 1, 1], [], []>} : vector<16x4xbf16>, vector<4x72xbf16>, vector<16x72xf32> -> vector<16x72xf32>
    %68 = arith.addf %63, %67 : vector<16x72xf32>
    %69 = vector.extract_strided_slice %6 {offsets = [8, 9], sizes = [4, 72], strides = [1, 1]} : vector<16x82xf32> to vector<4x72xf32>
    %70 = arith.truncf %69 : vector<4x72xf32> to vector<4x72xbf16>
    %71 = vector.extract_strided_slice %7 {offsets = [0, 48], sizes = [16, 4], strides = [1, 1]} : vector<16x64xbf16> to vector<16x4xbf16>
    %cst_18 = arith.constant dense<0.000000e+00> : vector<16x72xf32>
    %72 = tpu.matmul %71, %70, %cst_18 {dimension_numbers = #tpu.dot_dimension_numbers<[1], [0], [0], [1], [0, 0, 1, 1], [], []>} : vector<16x4xbf16>, vector<4x72xbf16>, vector<16x72xf32> -> vector<16x72xf32>
    %73 = arith.addf %68, %72 : vector<16x72xf32>
    %74 = vector.extract_strided_slice %6 {offsets = [12, 9], sizes = [4, 72], strides = [1, 1]} : vector<16x82xf32> to vector<4x72xf32>
    %75 = arith.truncf %74 : vector<4x72xf32> to vector<4x72xbf16>
    %76 = vector.extract_strided_slice %7 {offsets = [0, 52], sizes = [16, 4], strides = [1, 1]} : vector<16x64xbf16> to vector<16x4xbf16>
    %cst_19 = arith.constant dense<0.000000e+00> : vector<16x72xf32>
    %77 = tpu.matmul %76, %75, %cst_19 {dimension_numbers = #tpu.dot_dimension_numbers<[1], [0], [0], [1], [0, 0, 1, 1], [], []>} : vector<16x4xbf16>, vector<4x72xbf16>, vector<16x72xf32> -> vector<16x72xf32>
    %78 = arith.addf %73, %77 : vector<16x72xf32>
    %79 = vector.extract_strided_slice %6 {offsets = [8, 10], sizes = [4, 72], strides = [1, 1]} : vector<16x82xf32> to vector<4x72xf32>
    %80 = arith.truncf %79 : vector<4x72xf32> to vector<4x72xbf16>
    %81 = vector.extract_strided_slice %7 {offsets = [0, 56], sizes = [16, 4], strides = [1, 1]} : vector<16x64xbf16> to vector<16x4xbf16>
    %cst_20 = arith.constant dense<0.000000e+00> : vector<16x72xf32>
    %82 = tpu.matmul %81, %80, %cst_20 {dimension_numbers = #tpu.dot_dimension_numbers<[1], [0], [0], [1], [0, 0, 1, 1], [], []>} : vector<16x4xbf16>, vector<4x72xbf16>, vector<16x72xf32> -> vector<16x72xf32>
    %83 = arith.addf %78, %82 : vector<16x72xf32>
    %84 = vector.extract_strided_slice %6 {offsets = [12, 10], sizes = [4, 72], strides = [1, 1]} : vector<16x82xf32> to vector<4x72xf32>
    %85 = arith.truncf %84 : vector<4x72xf32> to vector<4x72xbf16>
    %86 = vector.extract_strided_slice %7 {offsets = [0, 60], sizes = [16, 4], strides = [1, 1]} : vector<16x64xbf16> to vector<16x4xbf16>
    %cst_21 = arith.constant dense<0.000000e+00> : vector<16x72xf32>
    %87 = tpu.matmul %86, %85, %cst_21 {dimension_numbers = #tpu.dot_dimension_numbers<[1], [0], [0], [1], [0, 0, 1, 1], [], []>} : vector<16x4xbf16>, vector<4x72xbf16>, vector<16x72xf32> -> vector<16x72xf32>
    %88 = arith.addf %83, %87 : vector<16x72xf32>
    %89 = vector.extract_strided_slice %88 {offsets = [0, 0], sizes = [8, 72], strides = [1, 1]} : vector<16x72xf32> to vector<8x72xf32>
    %c0_22 = arith.constant 0 : index
    %c0_23 = arith.constant 0 : index
    %c0_24 = arith.constant 0 : index
    %90 = vector.load %arg3[%c0_22, %c0_23, %c0_24] : memref<1x8x72xf32, #tpu.memory_space<vmem>>, vector<1x8x72xf32>
    %91 = vector.shape_cast %90 : vector<1x8x72xf32> to vector<8x72xf32>
    %92 = vector.shape_cast %89 : vector<8x72xf32> to vector<1x8x72xf32>
    tpu.vector_store %arg3[%c0_22, %c0_23, %c0_24], %92 {strides = array<i32>} : memref<1x8x72xf32, #tpu.memory_space<vmem>>, vector<1x8x72xf32>,
    %93 = vector.extract_strided_slice %88 {offsets = [8, 0], sizes = [8, 72], strides = [1, 1]} : vector<16x72xf32> to vector<8x72xf32>
    %c0_25 = arith.constant 0 : index
    %c0_26 = arith.constant 0 : index
    %c0_27 = arith.constant 0 : index
    %94 = vector.load %arg4[%c0_25, %c0_26, %c0_27] : memref<1x8x72xf32, #tpu.memory_space<vmem>>, vector<1x8x72xf32>
    %95 = vector.shape_cast %94 : vector<1x8x72xf32> to vector<8x72xf32>
    %96 = vector.shape_cast %93 : vector<8x72xf32> to vector<1x8x72xf32>
    tpu.vector_store %arg4[%c0_25, %c0_26, %c0_27], %96 {strides = array<i32>} : memref<1x8x72xf32, #tpu.memory_space<vmem>>, vector<1x8x72xf32>,
    return
  }
  func.func @transform_0(%arg0: i32) -> (i32, i32, i32) {
    %c0_i32 = arith.constant 0 : i32
    %c0_i32_0 = arith.constant 0 : i32
    %c0_i32_1 = arith.constant 0 : i32
    return %arg0, %c0_i32, %c0_i32_0 : i32, i32, i32
  }
  func.func @transform_1(%arg0: i32) -> (i32, i32) {
    %c0_i32 = arith.constant 0 : i32
    %c0_i32_0 = arith.constant 0 : i32
    %c0_i32_1 = arith.constant 0 : i32
    return %c0_i32, %c0_i32_0 : i32, i32
  }
  func.func @transform_2(%arg0: i32) -> (i32, i32, i32) {
    %c0_i32 = arith.constant 0 : i32
    %c0_i32_0 = arith.constant 0 : i32
    %c0_i32_1 = arith.constant 0 : i32
    return %arg0, %c0_i32, %c0_i32_0 : i32, i32, i32
  }
  func.func @transform_3(%arg0: i32) -> (i32, i32, i32) {
    %c0_i32 = arith.constant 0 : i32
    %c0_i32_0 = arith.constant 0 : i32
    %c0_i32_1 = arith.constant 0 : i32
    return %arg0, %c0_i32, %c0_i32_0 : i32, i32, i32
  }
}

module attributes {stable_mosaic.version = 11 : i64} {
  func.func @_upsample_kernel(%arg0: i32, %arg1: memref<1x8x8x9xf32, #tpu.memory_space<vmem>>, %arg2: memref<8x18xbf16, #tpu.memory_space<vmem>>, %arg3: memref<19x8xbf16, #tpu.memory_space<vmem>>, %arg4: memref<1x8x19x18xbf16, #tpu.memory_space<vmem>>) attributes {dimension_semantics = [#tpu.dimension_semantics<parallel>], iteration_bounds = array<i64: 2>, scalar_prefetch = 0 : i64, scratch_operands = 0 : i64, tpu.core_type = #tpu.core_type<tc>, window_params = [{transform_indices = @transform_0, window_bounds = array<i64: 1, 8, 8, 9>}, {pipeline_mode = #tpu.pipeline_mode<synchronous>, transform_indices = @transform_1, window_bounds = array<i64: 8, 18>}, {pipeline_mode = #tpu.pipeline_mode<synchronous>, transform_indices = @transform_2, window_bounds = array<i64: 19, 8>}, {transform_indices = @transform_3, window_bounds = array<i64: 1, 8, 19, 18>}]} {
    %c0 = arith.constant 0 : index
    %c0_0 = arith.constant 0 : index
    %c0_1 = arith.constant 0 : index
    %c0_2 = arith.constant 0 : index
    %0 = vector.load %arg1[%c0, %c0_0, %c0_1, %c0_2] : memref<1x8x8x9xf32, #tpu.memory_space<vmem>>, vector<1x8x8x9xf32>
    %1 = vector.shape_cast %0 : vector<1x8x8x9xf32> to vector<8x8x9xf32>
    %2 = vector.extract_strided_slice %1 {offsets = [0, 0, 0], sizes = [8, 8, 8], strides = [1, 1, 1]} : vector<8x8x9xf32> to vector<8x8x8xf32>
    %cst = arith.constant 0.000000e+00 : f32
    %3 = vector.broadcast %cst : f32 to vector<8x8x8xf32>
    %4 = arith.maximumf %2, %3 : vector<8x8x8xf32>
    %5 = vector.shape_cast %4 : vector<8x8x8xf32> to vector<64x8xf32>
    %6 = arith.truncf %5 : vector<64x8xf32> to vector<64x8xbf16>
    %c0_3 = arith.constant 0 : index
    %c0_4 = arith.constant 0 : index
    %7 = vector.load %arg2[%c0_3, %c0_4] : memref<8x18xbf16, #tpu.memory_space<vmem>>, vector<8x18xbf16>
    %cst_5 = arith.constant dense<0.000000e+00> : vector<64x18xf32>
    %8 = tpu.matmul %6, %7, %cst_5 {dimension_numbers = #tpu.dot_dimension_numbers<[1], [0], [0], [1], [0, 0, 1, 1], [], []>} : vector<64x8xbf16>, vector<8x18xbf16>, vector<64x18xf32> -> vector<64x18xf32>
    %9 = vector.shape_cast %8 : vector<64x18xf32> to vector<8x8x18xf32>
    %10 = arith.truncf %9 : vector<8x8x18xf32> to vector<8x8x18xbf16>
    %c0_6 = arith.constant 0 : index
    %c0_7 = arith.constant 0 : index
    %11 = vector.load %arg3[%c0_6, %c0_7] : memref<19x8xbf16, #tpu.memory_space<vmem>>, vector<19x8xbf16>
    %12 = vector.shape_cast %11 : vector<19x8xbf16> to vector<1x19x8xbf16>
    %13 = vector.broadcast %12 : vector<1x19x8xbf16> to vector<8x19x8xbf16>
    "tpu.trace_start"() <{level = 10 : i32, message = "coh,chw->cow"}> : () -> ()
    %cst_8 = arith.constant dense<0.000000e+00> : vector<8x19x18xf32>
    %14 = tpu.matmul %13, %10, %cst_8 {dimension_numbers = #tpu.dot_dimension_numbers<[2], [1], [1], [2], [0, 0, 0, 1, 1, 2], [0], [0]>} : vector<8x19x8xbf16>, vector<8x8x18xbf16>, vector<8x19x18xf32> -> vector<8x19x18xf32>
    "tpu.trace_stop"() : () -> ()
    %15 = arith.truncf %14 : vector<8x19x18xf32> to vector<8x19x18xbf16>
    %c0_9 = arith.constant 0 : index
    %c0_10 = arith.constant 0 : index
    %c0_11 = arith.constant 0 : index
    %c0_12 = arith.constant 0 : index
    %16 = vector.load %arg4[%c0_9, %c0_10, %c0_11, %c0_12] : memref<1x8x19x18xbf16, #tpu.memory_space<vmem>>, vector<1x8x19x18xbf16>
    %17 = vector.shape_cast %16 : vector<1x8x19x18xbf16> to vector<8x19x18xbf16>
    %18 = vector.shape_cast %15 : vector<8x19x18xbf16> to vector<1x8x19x18xbf16>
    tpu.vector_store %arg4[%c0_9, %c0_10, %c0_11, %c0_12], %18 {strides = array<i32>} : memref<1x8x19x18xbf16, #tpu.memory_space<vmem>>, vector<1x8x19x18xbf16>,
    return
  }
  func.func @transform_0(%arg0: i32) -> (i32, i32, i32, i32) {
    %c0_i32 = arith.constant 0 : i32
    %c0_i32_0 = arith.constant 0 : i32
    %c0_i32_1 = arith.constant 0 : i32
    %c0_i32_2 = arith.constant 0 : i32
    return %arg0, %c0_i32, %c0_i32_0, %c0_i32_1 : i32, i32, i32, i32
  }
  func.func @transform_1(%arg0: i32) -> (i32, i32) {
    %c0_i32 = arith.constant 0 : i32
    %c0_i32_0 = arith.constant 0 : i32
    %c0_i32_1 = arith.constant 0 : i32
    return %c0_i32, %c0_i32_0 : i32, i32
  }
  func.func @transform_2(%arg0: i32) -> (i32, i32) {
    %c0_i32 = arith.constant 0 : i32
    %c0_i32_0 = arith.constant 0 : i32
    %c0_i32_1 = arith.constant 0 : i32
    return %c0_i32, %c0_i32_0 : i32, i32
  }
  func.func @transform_3(%arg0: i32) -> (i32, i32, i32, i32) {
    %c0_i32 = arith.constant 0 : i32
    %c0_i32_0 = arith.constant 0 : i32
    %c0_i32_1 = arith.constant 0 : i32
    %c0_i32_2 = arith.constant 0 : i32
    return %arg0, %c0_i32, %c0_i32_0, %c0_i32_1 : i32, i32, i32, i32
  }
}

module attributes {stable_mosaic.version = 11 : i64} {
  func.func @_upconv_stats_kernel(%arg0: i32, %arg1: memref<1x8x342xbf16, #tpu.memory_space<vmem>>, %arg2: memref<4x72xbf16, #tpu.memory_space<vmem>>, %arg3: memref<1x288xf32, #tpu.memory_space<vmem>>, %arg4: memref<1x4x288xf32, #tpu.memory_space<vmem>>, %arg5: memref<4x2xf32, #tpu.memory_space<vmem>>) attributes {dimension_semantics = [#tpu.dimension_semantics<arbitrary>], iteration_bounds = array<i64: 2>, scalar_prefetch = 0 : i64, scratch_operands = 0 : i64, tpu.core_type = #tpu.core_type<tc>, window_params = [{transform_indices = @transform_0, window_bounds = array<i64: 1, 8, 342>}, {pipeline_mode = #tpu.pipeline_mode<synchronous>, transform_indices = @transform_1, window_bounds = array<i64: 4, 72>}, {pipeline_mode = #tpu.pipeline_mode<synchronous>, transform_indices = @transform_2, window_bounds = array<i64: 1, 288>}, {transform_indices = @transform_3, window_bounds = array<i64: 1, 4, 288>}, {pipeline_mode = #tpu.pipeline_mode<synchronous>, transform_indices = @transform_4, window_bounds = array<i64: 4, 2>}]} {
    %c0 = arith.constant 0 : index
    %c0_0 = arith.constant 0 : index
    %c0_1 = arith.constant 0 : index
    %0 = vector.load %arg1[%c0, %c0_0, %c0_1] : memref<1x8x342xbf16, #tpu.memory_space<vmem>>, vector<1x8x342xbf16>
    %1 = vector.shape_cast %0 : vector<1x8x342xbf16> to vector<8x342xbf16>
    %c0_2 = arith.constant 0 : index
    %c0_3 = arith.constant 0 : index
    %2 = vector.load %arg2[%c0_2, %c0_3] : memref<4x72xbf16, #tpu.memory_space<vmem>>, vector<4x72xbf16>
    %cst = arith.constant 0.000000e+00 : f32
    %3 = vector.broadcast %cst : f32 to vector<4x288xf32>
    %4 = vector.extract_strided_slice %1 {offsets = [0, 0], sizes = [8, 288], strides = [1, 1]} : vector<8x342xbf16> to vector<8x288xbf16>
    %5 = vector.extract_strided_slice %2 {offsets = [0, 0], sizes = [4, 8], strides = [1, 1]} : vector<4x72xbf16> to vector<4x8xbf16>
    %cst_4 = arith.constant dense<0.000000e+00> : vector<4x288xf32>
    %6 = tpu.matmul %5, %4, %cst_4 {dimension_numbers = #tpu.dot_dimension_numbers<[1], [0], [0], [1], [0, 0, 1, 1], [], []>} : vector<4x8xbf16>, vector<8x288xbf16>, vector<4x288xf32> -> vector<4x288xf32>
    %7 = arith.addf %3, %6 : vector<4x288xf32>
    %8 = vector.extract_strided_slice %1 {offsets = [0, 1], sizes = [8, 288], strides = [1, 1]} : vector<8x342xbf16> to vector<8x288xbf16>
    %9 = vector.extract_strided_slice %2 {offsets = [0, 8], sizes = [4, 8], strides = [1, 1]} : vector<4x72xbf16> to vector<4x8xbf16>
    %cst_5 = arith.constant dense<0.000000e+00> : vector<4x288xf32>
    %10 = tpu.matmul %9, %8, %cst_5 {dimension_numbers = #tpu.dot_dimension_numbers<[1], [0], [0], [1], [0, 0, 1, 1], [], []>} : vector<4x8xbf16>, vector<8x288xbf16>, vector<4x288xf32> -> vector<4x288xf32>
    %11 = arith.addf %7, %10 : vector<4x288xf32>
    %12 = vector.extract_strided_slice %1 {offsets = [0, 2], sizes = [8, 288], strides = [1, 1]} : vector<8x342xbf16> to vector<8x288xbf16>
    %13 = vector.extract_strided_slice %2 {offsets = [0, 16], sizes = [4, 8], strides = [1, 1]} : vector<4x72xbf16> to vector<4x8xbf16>
    %cst_6 = arith.constant dense<0.000000e+00> : vector<4x288xf32>
    %14 = tpu.matmul %13, %12, %cst_6 {dimension_numbers = #tpu.dot_dimension_numbers<[1], [0], [0], [1], [0, 0, 1, 1], [], []>} : vector<4x8xbf16>, vector<8x288xbf16>, vector<4x288xf32> -> vector<4x288xf32>
    %15 = arith.addf %11, %14 : vector<4x288xf32>
    %16 = vector.extract_strided_slice %1 {offsets = [0, 18], sizes = [8, 288], strides = [1, 1]} : vector<8x342xbf16> to vector<8x288xbf16>
    %17 = vector.extract_strided_slice %2 {offsets = [0, 24], sizes = [4, 8], strides = [1, 1]} : vector<4x72xbf16> to vector<4x8xbf16>
    %cst_7 = arith.constant dense<0.000000e+00> : vector<4x288xf32>
    %18 = tpu.matmul %17, %16, %cst_7 {dimension_numbers = #tpu.dot_dimension_numbers<[1], [0], [0], [1], [0, 0, 1, 1], [], []>} : vector<4x8xbf16>, vector<8x288xbf16>, vector<4x288xf32> -> vector<4x288xf32>
    %19 = arith.addf %15, %18 : vector<4x288xf32>
    %20 = vector.extract_strided_slice %1 {offsets = [0, 19], sizes = [8, 288], strides = [1, 1]} : vector<8x342xbf16> to vector<8x288xbf16>
    %21 = vector.extract_strided_slice %2 {offsets = [0, 32], sizes = [4, 8], strides = [1, 1]} : vector<4x72xbf16> to vector<4x8xbf16>
    %cst_8 = arith.constant dense<0.000000e+00> : vector<4x288xf32>
    %22 = tpu.matmul %21, %20, %cst_8 {dimension_numbers = #tpu.dot_dimension_numbers<[1], [0], [0], [1], [0, 0, 1, 1], [], []>} : vector<4x8xbf16>, vector<8x288xbf16>, vector<4x288xf32> -> vector<4x288xf32>
    %23 = arith.addf %19, %22 : vector<4x288xf32>
    %24 = vector.extract_strided_slice %1 {offsets = [0, 20], sizes = [8, 288], strides = [1, 1]} : vector<8x342xbf16> to vector<8x288xbf16>
    %25 = vector.extract_strided_slice %2 {offsets = [0, 40], sizes = [4, 8], strides = [1, 1]} : vector<4x72xbf16> to vector<4x8xbf16>
    %cst_9 = arith.constant dense<0.000000e+00> : vector<4x288xf32>
    %26 = tpu.matmul %25, %24, %cst_9 {dimension_numbers = #tpu.dot_dimension_numbers<[1], [0], [0], [1], [0, 0, 1, 1], [], []>} : vector<4x8xbf16>, vector<8x288xbf16>, vector<4x288xf32> -> vector<4x288xf32>
    %27 = arith.addf %23, %26 : vector<4x288xf32>
    %28 = vector.extract_strided_slice %1 {offsets = [0, 36], sizes = [8, 288], strides = [1, 1]} : vector<8x342xbf16> to vector<8x288xbf16>
    %29 = vector.extract_strided_slice %2 {offsets = [0, 48], sizes = [4, 8], strides = [1, 1]} : vector<4x72xbf16> to vector<4x8xbf16>
    %cst_10 = arith.constant dense<0.000000e+00> : vector<4x288xf32>
    %30 = tpu.matmul %29, %28, %cst_10 {dimension_numbers = #tpu.dot_dimension_numbers<[1], [0], [0], [1], [0, 0, 1, 1], [], []>} : vector<4x8xbf16>, vector<8x288xbf16>, vector<4x288xf32> -> vector<4x288xf32>
    %31 = arith.addf %27, %30 : vector<4x288xf32>
    %32 = vector.extract_strided_slice %1 {offsets = [0, 37], sizes = [8, 288], strides = [1, 1]} : vector<8x342xbf16> to vector<8x288xbf16>
    %33 = vector.extract_strided_slice %2 {offsets = [0, 56], sizes = [4, 8], strides = [1, 1]} : vector<4x72xbf16> to vector<4x8xbf16>
    %cst_11 = arith.constant dense<0.000000e+00> : vector<4x288xf32>
    %34 = tpu.matmul %33, %32, %cst_11 {dimension_numbers = #tpu.dot_dimension_numbers<[1], [0], [0], [1], [0, 0, 1, 1], [], []>} : vector<4x8xbf16>, vector<8x288xbf16>, vector<4x288xf32> -> vector<4x288xf32>
    %35 = arith.addf %31, %34 : vector<4x288xf32>
    %36 = vector.extract_strided_slice %1 {offsets = [0, 38], sizes = [8, 288], strides = [1, 1]} : vector<8x342xbf16> to vector<8x288xbf16>
    %37 = vector.extract_strided_slice %2 {offsets = [0, 64], sizes = [4, 8], strides = [1, 1]} : vector<4x72xbf16> to vector<4x8xbf16>
    %cst_12 = arith.constant dense<0.000000e+00> : vector<4x288xf32>
    %38 = tpu.matmul %37, %36, %cst_12 {dimension_numbers = #tpu.dot_dimension_numbers<[1], [0], [0], [1], [0, 0, 1, 1], [], []>} : vector<4x8xbf16>, vector<8x288xbf16>, vector<4x288xf32> -> vector<4x288xf32>
    %39 = arith.addf %35, %38 : vector<4x288xf32>
    %c0_13 = arith.constant 0 : index
    %c0_14 = arith.constant 0 : index
    %c0_15 = arith.constant 0 : index
    %40 = vector.load %arg4[%c0_13, %c0_14, %c0_15] : memref<1x4x288xf32, #tpu.memory_space<vmem>>, vector<1x4x288xf32>
    %41 = vector.shape_cast %40 : vector<1x4x288xf32> to vector<4x288xf32>
    %42 = vector.shape_cast %39 : vector<4x288xf32> to vector<1x4x288xf32>
    tpu.vector_store %arg4[%c0_13, %c0_14, %c0_15], %42 {strides = array<i32>} : memref<1x4x288xf32, #tpu.memory_space<vmem>>, vector<1x4x288xf32>,
    %c0_16 = arith.constant 0 : index
    %c0_17 = arith.constant 0 : index
    %43 = vector.load %arg3[%c0_16, %c0_17] : memref<1x288xf32, #tpu.memory_space<vmem>>, vector<1x288xf32>
    %44 = vector.broadcast %43 : vector<1x288xf32> to vector<4x288xf32>
    %45 = arith.mulf %39, %44 : vector<4x288xf32>
    %c0_i32 = arith.constant 0 : i32
    %46 = arith.cmpi eq, %arg0, %c0_i32 : i32
    %47 = arith.extui %46 : i1 to i32
    %c0_i32_18 = arith.constant 0 : i32
    %48 = arith.cmpi ne, %47, %c0_i32_18 : i32
    scf.if %48 {
      %cst_28 = arith.constant 0.000000e+00 : f32
      %60 = vector.broadcast %cst_28 : f32 to vector<4x2xf32>
      %c0_29 = arith.constant 0 : index
      %c0_30 = arith.constant 0 : index
      %61 = vector.load %arg5[%c0_29, %c0_30] : memref<4x2xf32, #tpu.memory_space<vmem>>, vector<4x2xf32>
      tpu.vector_store %arg5[%c0_29, %c0_30], %60 {strides = array<i32>} : memref<4x2xf32, #tpu.memory_space<vmem>>, vector<4x2xf32>,
    } else {
    }
    %c0_19 = arith.constant 0 : index
    %c0_20 = arith.constant 0 : index
    %49 = vector.load %arg5[%c0_19, %c0_20] : memref<4x2xf32, #tpu.memory_space<vmem>>, vector<4x1xf32>
    %cst_21 = arith.constant dense<0.000000e+00> : vector<4xf32>
    %50 = vector.multi_reduction <add>, %45, %cst_21 [1] : vector<4x288xf32> to vector<4xf32>
    %51 = vector.shape_cast %50 : vector<4xf32> to vector<4x1xf32>
    %52 = arith.addf %49, %51 : vector<4x1xf32>
    %c0_22 = arith.constant 0 : index
    %c0_23 = arith.constant 0 : index
    %53 = vector.load %arg5[%c0_22, %c0_23] : memref<4x2xf32, #tpu.memory_space<vmem>>, vector<4x1xf32>
    tpu.vector_store %arg5[%c0_22, %c0_23], %52 {strides = array<i32>} : memref<4x2xf32, #tpu.memory_space<vmem>>, vector<4x1xf32>,
    %c0_24 = arith.constant 0 : index
    %c1 = arith.constant 1 : index
    %54 = vector.load %arg5[%c0_24, %c1] : memref<4x2xf32, #tpu.memory_space<vmem>>, vector<4x1xf32>
    %55 = arith.mulf %45, %39 : vector<4x288xf32>
    %cst_25 = arith.constant dense<0.000000e+00> : vector<4xf32>
    %56 = vector.multi_reduction <add>, %55, %cst_25 [1] : vector<4x288xf32> to vector<4xf32>
    %57 = vector.shape_cast %56 : vector<4xf32> to vector<4x1xf32>
    %58 = arith.addf %54, %57 : vector<4x1xf32>
    %c0_26 = arith.constant 0 : index
    %c1_27 = arith.constant 1 : index
    %59 = vector.load %arg5[%c0_26, %c1_27] : memref<4x2xf32, #tpu.memory_space<vmem>>, vector<4x1xf32>
    tpu.vector_store %arg5[%c0_26, %c1_27], %58 {strides = array<i32>} : memref<4x2xf32, #tpu.memory_space<vmem>>, vector<4x1xf32>,
    return
  }
  func.func @transform_0(%arg0: i32) -> (i32, i32, i32) {
    %c0_i32 = arith.constant 0 : i32
    %c0_i32_0 = arith.constant 0 : i32
    %c0_i32_1 = arith.constant 0 : i32
    return %arg0, %c0_i32, %c0_i32_0 : i32, i32, i32
  }
  func.func @transform_1(%arg0: i32) -> (i32, i32) {
    %c0_i32 = arith.constant 0 : i32
    %c0_i32_0 = arith.constant 0 : i32
    %c0_i32_1 = arith.constant 0 : i32
    return %c0_i32, %c0_i32_0 : i32, i32
  }
  func.func @transform_2(%arg0: i32) -> (i32, i32) {
    %c0_i32 = arith.constant 0 : i32
    %c0_i32_0 = arith.constant 0 : i32
    %c0_i32_1 = arith.constant 0 : i32
    return %c0_i32, %c0_i32_0 : i32, i32
  }
  func.func @transform_3(%arg0: i32) -> (i32, i32, i32) {
    %c0_i32 = arith.constant 0 : i32
    %c0_i32_0 = arith.constant 0 : i32
    %c0_i32_1 = arith.constant 0 : i32
    return %arg0, %c0_i32, %c0_i32_0 : i32, i32, i32
  }
  func.func @transform_4(%arg0: i32) -> (i32, i32) {
    %c0_i32 = arith.constant 0 : i32
    %c0_i32_0 = arith.constant 0 : i32
    %c0_i32_1 = arith.constant 0 : i32
    return %c0_i32, %c0_i32_0 : i32, i32
  }
}

module attributes {stable_mosaic.version = 11 : i64} {
  func.func @_bn_apply_kernel(%arg0: i32, %arg1: memref<1x4x288xf32, #tpu.memory_space<vmem>>, %arg2: memref<4xf32, #tpu.memory_space<smem>>, %arg3: memref<4xf32, #tpu.memory_space<smem>>, %arg4: memref<1x4x288xf32, #tpu.memory_space<vmem>>) attributes {dimension_semantics = [#tpu.dimension_semantics<parallel>], iteration_bounds = array<i64: 2>, scalar_prefetch = 0 : i64, scratch_operands = 0 : i64, tpu.core_type = #tpu.core_type<tc>, window_params = [{transform_indices = @transform_0, window_bounds = array<i64: 1, 4, 288>}, {transform_indices = @transform_1, window_bounds = array<i64: 4>}, {transform_indices = @transform_2, window_bounds = array<i64: 4>}, {transform_indices = @transform_3, window_bounds = array<i64: 1, 4, 288>}]} {
    %c0 = arith.constant 0 : index
    %c0_0 = arith.constant 0 : index
    %c0_1 = arith.constant 0 : index
    %0 = vector.load %arg1[%c0, %c0_0, %c0_1] : memref<1x4x288xf32, #tpu.memory_space<vmem>>, vector<1x4x288xf32>
    %1 = vector.shape_cast %0 : vector<1x4x288xf32> to vector<4x288xf32>
    %2 = vector.extract_strided_slice %1 {offsets = [0, 0], sizes = [1, 288], strides = [1, 1]} : vector<4x288xf32> to vector<1x288xf32>
    %c0_2 = arith.constant 0 : index
    %3 = memref.load %arg2[%c0_2] : memref<4xf32, #tpu.memory_space<smem>>
    %4 = vector.broadcast %3 : f32 to vector<1x288xf32>
    %5 = arith.mulf %2, %4 : vector<1x288xf32>
    %c0_3 = arith.constant 0 : index
    %6 = memref.load %arg3[%c0_3] : memref<4xf32, #tpu.memory_space<smem>>
    %7 = vector.broadcast %6 : f32 to vector<1x288xf32>
    %8 = arith.addf %5, %7 : vector<1x288xf32>
    %c0_4 = arith.constant 0 : index
    %c0_5 = arith.constant 0 : index
    %c0_6 = arith.constant 0 : index
    %9 = vector.load %arg4[%c0_4, %c0_5, %c0_6] : memref<1x4x288xf32, #tpu.memory_space<vmem>>, vector<1x1x288xf32>
    %10 = vector.shape_cast %9 : vector<1x1x288xf32> to vector<1x288xf32>
    %11 = vector.shape_cast %8 : vector<1x288xf32> to vector<1x1x288xf32>
    tpu.vector_store %arg4[%c0_4, %c0_5, %c0_6], %11 {strides = array<i32>} : memref<1x4x288xf32, #tpu.memory_space<vmem>>, vector<1x1x288xf32>,
    %12 = vector.extract_strided_slice %1 {offsets = [1, 0], sizes = [1, 288], strides = [1, 1]} : vector<4x288xf32> to vector<1x288xf32>
    %c1 = arith.constant 1 : index
    %13 = memref.load %arg2[%c1] : memref<4xf32, #tpu.memory_space<smem>>
    %14 = vector.broadcast %13 : f32 to vector<1x288xf32>
    %15 = arith.mulf %12, %14 : vector<1x288xf32>
    %c1_7 = arith.constant 1 : index
    %16 = memref.load %arg3[%c1_7] : memref<4xf32, #tpu.memory_space<smem>>
    %17 = vector.broadcast %16 : f32 to vector<1x288xf32>
    %18 = arith.addf %15, %17 : vector<1x288xf32>
    %c0_8 = arith.constant 0 : index
    %c1_9 = arith.constant 1 : index
    %c0_10 = arith.constant 0 : index
    %19 = vector.load %arg4[%c0_8, %c1_9, %c0_10] : memref<1x4x288xf32, #tpu.memory_space<vmem>>, vector<1x1x288xf32>
    %20 = vector.shape_cast %19 : vector<1x1x288xf32> to vector<1x288xf32>
    %21 = vector.shape_cast %18 : vector<1x288xf32> to vector<1x1x288xf32>
    tpu.vector_store %arg4[%c0_8, %c1_9, %c0_10], %21 {strides = array<i32>} : memref<1x4x288xf32, #tpu.memory_space<vmem>>, vector<1x1x288xf32>,
    %22 = vector.extract_strided_slice %1 {offsets = [2, 0], sizes = [1, 288], strides = [1, 1]} : vector<4x288xf32> to vector<1x288xf32>
    %c2 = arith.constant 2 : index
    %23 = memref.load %arg2[%c2] : memref<4xf32, #tpu.memory_space<smem>>
    %24 = vector.broadcast %23 : f32 to vector<1x288xf32>
    %25 = arith.mulf %22, %24 : vector<1x288xf32>
    %c2_11 = arith.constant 2 : index
    %26 = memref.load %arg3[%c2_11] : memref<4xf32, #tpu.memory_space<smem>>
    %27 = vector.broadcast %26 : f32 to vector<1x288xf32>
    %28 = arith.addf %25, %27 : vector<1x288xf32>
    %c0_12 = arith.constant 0 : index
    %c2_13 = arith.constant 2 : index
    %c0_14 = arith.constant 0 : index
    %29 = vector.load %arg4[%c0_12, %c2_13, %c0_14] : memref<1x4x288xf32, #tpu.memory_space<vmem>>, vector<1x1x288xf32>
    %30 = vector.shape_cast %29 : vector<1x1x288xf32> to vector<1x288xf32>
    %31 = vector.shape_cast %28 : vector<1x288xf32> to vector<1x1x288xf32>
    tpu.vector_store %arg4[%c0_12, %c2_13, %c0_14], %31 {strides = array<i32>} : memref<1x4x288xf32, #tpu.memory_space<vmem>>, vector<1x1x288xf32>,
    %32 = vector.extract_strided_slice %1 {offsets = [3, 0], sizes = [1, 288], strides = [1, 1]} : vector<4x288xf32> to vector<1x288xf32>
    %c3 = arith.constant 3 : index
    %33 = memref.load %arg2[%c3] : memref<4xf32, #tpu.memory_space<smem>>
    %34 = vector.broadcast %33 : f32 to vector<1x288xf32>
    %35 = arith.mulf %32, %34 : vector<1x288xf32>
    %c3_15 = arith.constant 3 : index
    %36 = memref.load %arg3[%c3_15] : memref<4xf32, #tpu.memory_space<smem>>
    %37 = vector.broadcast %36 : f32 to vector<1x288xf32>
    %38 = arith.addf %35, %37 : vector<1x288xf32>
    %c0_16 = arith.constant 0 : index
    %c3_17 = arith.constant 3 : index
    %c0_18 = arith.constant 0 : index
    %39 = vector.load %arg4[%c0_16, %c3_17, %c0_18] : memref<1x4x288xf32, #tpu.memory_space<vmem>>, vector<1x1x288xf32>
    %40 = vector.shape_cast %39 : vector<1x1x288xf32> to vector<1x288xf32>
    %41 = vector.shape_cast %38 : vector<1x288xf32> to vector<1x1x288xf32>
    tpu.vector_store %arg4[%c0_16, %c3_17, %c0_18], %41 {strides = array<i32>} : memref<1x4x288xf32, #tpu.memory_space<vmem>>, vector<1x1x288xf32>,
    return
  }
  func.func @transform_0(%arg0: i32) -> (i32, i32, i32) {
    %c0_i32 = arith.constant 0 : i32
    %c0_i32_0 = arith.constant 0 : i32
    %c0_i32_1 = arith.constant 0 : i32
    return %arg0, %c0_i32, %c0_i32_0 : i32, i32, i32
  }
  func.func @transform_1(%arg0: i32) -> i32 {
    %c0_i32 = arith.constant 0 : i32
    %c0_i32_0 = arith.constant 0 : i32
    return %c0_i32 : i32
  }
  func.func @transform_2(%arg0: i32) -> i32 {
    %c0_i32 = arith.constant 0 : i32
    %c0_i32_0 = arith.constant 0 : i32
    return %c0_i32 : i32
  }
  func.func @transform_3(%arg0: i32) -> (i32, i32, i32) {
    %c0_i32 = arith.constant 0 : i32
    %c0_i32_0 = arith.constant 0 : i32
    %c0_i32_1 = arith.constant 0 : i32
    return %arg0, %c0_i32, %c0_i32_0 : i32, i32, i32
  }
}

</mosaic_0001>

<bundles_post_ra>
// kernel: _lambda_.4
= control target key start
LH: loop header
LB: loop body
LE: loop exit
PB: predicated region body
PF: predicated region fallthrough
CT: control target
= control target key end

     0   :  { %s798_s12 = smov 0   ;;  %s875_s0 = inlined_call_operand.vmem [shape: f32[2,16,82], index: 0, kind: input, shape index: {}]   ;;  %s876_s1 = inlined_call_operand.vmem [shape: bf16[16,64], index: 1, kind: input, shape index: {}]   ;;  %s877_s2 = inlined_call_operand.vmem [shape: f32[2,8,72], index: 2, kind: output, shape index: {0}]   ;;  %s878_s3 = inlined_call_operand.vmem [shape: f32[2,8,72], index: 3, kind: output, shape index: {1}]  }
   0x1 LB: > { %s693_s13 = sadd.s32 4294967295, %s758_s12   ;;  %p697_p0 = scmp.ge.s32.totalorder %s758_s12, 1  ;;  %s758_s12 = sphi %s798_s12, %s14_s12  }
   0x2   : > { %p140_p1 = scmp.lt.s32.totalorder %s758_s12, 3 }
   0x4   : > { %p141_p2 = pnand %p697_p0, %p140_p1 }
   0x5   : > { %p167_p3 = scmp.lt.s32.totalorder (!%p141_p2), %s693_s13, 1  ;;  %s760_s16 = smov (!%p141_p2), 120  }
   0x6   : > { %144 = sbr.rel (%p141_p2) target bundleno = 342 (0x156), region = 28  ;;  %s761_s18 = smov (!%p141_p2), 116  }
   0x7   : > { %s762_s22 = smov (!%p141_p2), 124   ;;  %s763_s23 = smov (!%p141_p2), 127  }
   0x8   : > { %s764_s24 = smov (!%p141_p2), 104   ;;  %s765_s25 = smov (!%p141_p2), 112  }
   0x9   : > { %s766_s26 = smov (!%p141_p2), 108   ;;  %s767_s27 = smov (!%p141_p2), 118  }
   0xa   : > { %s768_s28 = smov (!%p141_p2), 100   ;;  %s769_s29 = smov (!%p141_p2), 119  }
   0xb   : > { %v809_v0 = vld [vmem:[%s876_s1] sm:$0xff]  ;;  %s880_s13 = smov (!%p167_p3, %s693_s13), 1  ;;  %s770_s30 = smov 96   ;;  %vm205_vm2 = vcmask 1041408   ;;  %vm201_vm3 = vcmask 31744   ;;  %vm606_vm4 = vcmask 588800  }
   0xc   : > { %243 = vrot.lane.b32.xlu1 %v809_v0, %s760_s16  ;;  %s724_s17 = sshll.u32 %s880_s13, 4  ;;  %269 = vrot.lane.b32.xlu2 %v809_v0, %s761_s18  ;;  %s771_s4 = smov 84  }
   0xd   : > { %s171_s21 = scalar_lea.vmem %s875_s0, %s724_s17  ;;  %s772_s5 = smov 88  }
   0xe   : > { %v181_v1 = vld [vmem:[%s171_s21] sm:$0xff]  ;;  %v182_v2 = vld [vmem:[%s171_s21 + $0x8] sm:$0xff]  ;;  %s773_s6 = smov 92   ;;  %s774_s7 = smov 72  }
   0xf   : > { %vm183_vm0 = vcmp.gt.f32.partialorder %v181_v1, 0.0  ;;  %vm184_vm1 = vcmp.gt.f32.partialorder %v182_v2, 0.0  ;;  %v185_v3 = vmul.f32 0.2, %v181_v1  ;;  %v186_v4 = vmul.f32 0.2, %v182_v2 }
  0x10   : > { %s775_s8 = smov 68   ;;  %s776_s9 = smov 76  }
  0x11   : > { %v187_v5 = vsel %vm183_vm0, %v181_v1, %v185_v3  ;;  %v188_v6 = vsel %vm184_vm1, %v182_v2, %v186_v4  ;;  %s777_s10 = smov 80   ;;  %s700_s11 = sshll.u32 %s880_s13, 3 }
  0x12   : > { %v191_v7 = vpack.c.bf16 %v187_v5, %v187_v5  ;;  %v295_v8 = vpack.c.bf16 %v188_v6, %v188_v6  ;;  %s175_s16 = scalar_lea.vmem %s877_s2, %s700_s11  ;;  %s179_s13 = scalar_lea.vmem %s878_s3, %s700_s11 }
  0x14   : > { %197 = vrot.lane.b32.xlu1 %v809_v0, %s762_s22  ;;  %245 = vrot.lane.b32.xlu0 %v191_v7, %s763_s23  ;;  %v200_v9 = vrot.slane %v191_v7, 2  ;;  %v323_v10 = vrot.slane %v295_v8, 2  ;;  %v227_v12 = vsel %vm205_vm2, %v191_v7, 0  ;;  %v302_v15 = vsel %vm205_vm2, %v295_v8, 0 }
  0x15   : > { %348 = vrot.lane.b32.xlu2 %v295_v8, %s763_s23  ;;  %236 = vmatpush.bf16.msra.mxu1 %v227_v12 }
  0x16   : > { %v207_v11 = vsel %vm205_vm2, %v200_v9, 0  ;;  %v328_v16 = vsel %vm205_vm2, %v323_v10, 0 }
  0x17   : > { %216 = vmatpush.bf16.msra.mxu0 %v207_v11 }
  0x18   : > { %707 = vmatmul.msk.bf16.vlgmr.msra.gmra.mxu1 %vm201_vm3, %v809_v0 }
  0x19   : > { %337 = vmatpush.bf16.msrb.mxu1 %v328_v16 }
  0x1b   : > { %311 = vmatpush.bf16.msrb.mxu0 %v302_v15 }
  0x1c   : > { %346 = vrot.lane.b32.xlu1 %v809_v0, %s764_s24  ;;  %271 = vrot.lane.b32.xlu0 %v200_v9, %s763_s23 }
  0x1d   : > { %296 = vrot.lane.b32.xlu2 %v809_v0, %s765_s25 }
  0x24   : > { %320 = vrot.lane.b32.xlu1 %v809_v0, %s766_s26  ;;  %374 = vrot.lane.b32.xlu0 %v323_v10, %s763_s23 }
  0x25   : > { %452 = vrot.lane.b32.xlu2 %v191_v7, %s767_s27 }
  0x2c   : > { %478 = vrot.lane.b32.xlu1 %v200_v9, %s767_s27  ;;  %372 = vrot.lane.b32.xlu0 %v809_v0, %s768_s28 }
  0x2d   : > { %426 = vrot.lane.b32.xlu2 %v200_v9, %s769_s29 }
  0x34   : > { %398 = vrot.lane.b32.xlu1 %v809_v0, %s770_s30  ;;  %400 = vrot.lane.b32.xlu0 %v191_v7, %s769_s29 }
  0x35   : > { %476 = vrot.lane.b32.xlu2 %v809_v0, %s771_s4 }
  0x3c   : > { %556 = vrot.lane.b32.xlu1 %v295_v8, %s767_s27  ;;  %450 = vrot.lane.b32.xlu0 %v809_v0, %s772_s5 }
  0x3d   : > { %504 = vrot.lane.b32.xlu2 %v295_v8, %s769_s29 }
  0x44   : > { %530 = vrot.lane.b32.xlu1 %v323_v10, %s769_s29  ;;  %424 = vrot.lane.b32.xlu0 %v809_v0, %s773_s6 }
  0x45   : > { %554 = vrot.lane.b32.xlu2 %v809_v0, %s774_s7 }
  0x4c   : > { %580 = vrot.lane.b32.xlu1 %v809_v0, %s775_s8  ;;  %582 = vrot.lane.b32.xlu0 %v323_v10, %s767_s27 }
  0x4d   : > { %528 = vrot.lane.b32.xlu2 %v809_v0, %s776_s9 }
  0x54   : > { %502 = vrot.lane.b32.xlu0 %v809_v0, %s777_s10 }
  0x66   : > { %v270_v13 = vpop.permute.xlu2 %269 }
  0x6f   : > { %v349_v14 = vpop.permute.xlu2 %348 }
  0x70   : > { %v354_v22 = vsel %vm205_vm2, %v349_v14, 0 }
  0x77   : > { %v297_v17 = vpop.permute.xlu2 %296 }
  0x7e   : > { %v244_v18 = vpop.permute.xlu1 %243 }
  0x7f   : > { %v453_v19 = vpop.permute.xlu2 %452 }
  0x80   : > { %v458_v26 = vsel %vm205_vm2, %v453_v19, 0 }
  0x86   : > { %v198_v20 = vpop.permute.xlu1 %197  ;;  %v246_v21 = vpop.permute.xlu0 %245 }
  0x87   : > { %706 = vmatmul.msk.bf16.vlgmr.msra.gmra.mxu0 %vm201_vm3, %v198_v20  ;;  %v427_v23 = vpop.permute.xlu2 %426  ;;  %v251_v24 = vsel %vm205_vm2, %v246_v21, 0 }
  0x88   : > { %v432_v25 = vsel %vm205_vm2, %v427_v23, 0  ;;  %260 = vmatpush.bf16.msra.mxu2 %v251_v24 }
  0x89   : > { %441 = vmatpush.bf16.msra.mxu1 %v432_v25 }
  0x8b   : > { %708 = vmatmul.msk.bf16.vlgmr.msra.gmra.mxu2 %vm201_vm3, %v244_v18 }
  0x8c   : > { %363 = vmatpush.bf16.msrb.mxu2 %v354_v22 }
  0x8e   : > { %v347_v27 = vpop.permute.xlu1 %346  ;;  %v272_v28 = vpop.permute.xlu0 %271 }
  0x8f   : > { %v277_v29 = vsel %vm205_vm2, %v272_v28, 0  ;;  %v477_v34 = vpop.permute.xlu2 %476 }
  0x90   : > { %467 = vmatpush.bf16.msra.mxu2 %v458_v26  ;;  %286 = vmatpush.bf16.msra.mxu3 %v277_v29 }
  0x93   : > { %709 = vmatmul.msk.bf16.vlgmr.msra.gmra.mxu3 %vm201_vm3, %v270_v13 }
  0x95   : > { %v238_v55 = vpop.f32.mrf.mxu1 }
  0x96   : > { %v321_v30 = vpop.permute.xlu1 %320  ;;  %v375_v31 = vpop.permute.xlu0 %374 }
  0x97   : > { %710 = vmatmul.msk.bf16.vlgmr.msrb.gmra.mxu0 %vm201_vm3, %v297_v17  ;;  %711 = vmatmul.msk.bf16.vlgmr.msrb.gmra.mxu1 %vm201_vm3, %v321_v30  ;;  %v380_v32 = vsel %vm205_vm2, %v375_v31, 0  ;;  %v505_v38 = vpop.permute.xlu2 %504 }
  0x98   : > { %389 = vmatpush.bf16.msrb.mxu3 %v380_v32  ;;  %v510_v40 = vsel %vm205_vm2, %v505_v38, 0 }
  0x9b   : > { %712 = vmatmul.msk.bf16.vlgmr.msrb.gmra.mxu2 %vm201_vm3, %v347_v27 }
  0x9d   : > { %v240_v60 = vpop.f32.mrf.mxu1 }
  0x9e   : > { %v479_v33 = vpop.permute.xlu1 %478  ;;  %v373_v36 = vpop.permute.xlu0 %372 }
  0x9f   : > { %v484_v35 = vsel %vm205_vm2, %v479_v33, 0  ;;  %v555_v48 = vpop.permute.xlu2 %554 }
  0xa0   : > { %493 = vmatpush.bf16.msra.mxu3 %v484_v35 }
  0xa3   : > { %713 = vmatmul.msk.bf16.vlgmr.msrb.gmra.mxu3 %vm201_vm3, %v373_v36 }
  0xa6   : > { %v399_v37 = vpop.permute.xlu1 %398  ;;  %v401_v39 = vpop.permute.xlu0 %400 }
  0xa7   : > { %v406_v41 = vsel %vm205_vm2, %v401_v39, 0  ;;  %v529_v52 = vpop.permute.xlu2 %528 }
  0xa8   : > { %415 = vmatpush.bf16.msra.mxu0 %v406_v41 }
  0xab   : > { %714 = vmatmul.msk.bf16.vlgmr.msra.gmra.mxu0 %vm201_vm3, %v399_v37 }
  0xac   : > { %519 = vmatpush.bf16.msrb.mxu0 %v510_v40 }
  0xae   : > { %v557_v42 = vpop.permute.xlu1 %556  ;;  %v451_v44 = vpop.permute.xlu0 %450 }
  0xaf   : > { %v562_v43 = vsel %vm205_vm2, %v557_v42, 0  ;;  %716 = vmatmul.msk.bf16.vlgmr.msra.gmra.mxu2 %vm201_vm3, %v451_v44 }
  0xb0   : > { %571 = vmatpush.bf16.msrb.mxu2 %v562_v43 }
  0xb3   : > { %717 = vmatmul.msk.bf16.vlgmr.msra.gmra.mxu3 %vm201_vm3, %v477_v34 }
  0xb6   : > { %v531_v45 = vpop.permute.xlu1 %530  ;;  %v425_v47 = vpop.permute.xlu0 %424 }
  0xb7   : > { %v536_v46 = vsel %vm205_vm2, %v531_v45, 0  ;;  %715 = vmatmul.msk.bf16.vlgmr.msra.gmra.mxu1 %vm201_vm3, %v425_v47 }
  0xb8   : > { %545 = vmatpush.bf16.msrb.mxu1 %v536_v46 }
  0xbe   : > { %v583_v49 = vpop.permute.xlu0 %582  ;;  %v581_v51 = vpop.permute.xlu1 %580 }
  0xbf   : > { %v588_v50 = vsel %vm205_vm2, %v583_v49, 0  ;;  %720 = vmatmul.msk.bf16.vlgmr.msrb.gmra.mxu2 %vm201_vm3, %v555_v48 }
  0xc0   : > { %597 = vmatpush.bf16.msrb.mxu3 %v588_v50 }
  0xc3   : > { %721 = vmatmul.msk.bf16.vlgmr.msrb.gmra.mxu3 %vm201_vm3, %v581_v51 }
  0xc6   : > { %v503_v53 = vpop.permute.xlu0 %502 }
  0xc7   : > { %718 = vmatmul.msk.bf16.vlgmr.msrb.gmra.mxu0 %vm201_vm3, %v503_v53  ;;  %719 = vmatmul.msk.bf16.vlgmr.msrb.gmra.mxu1 %vm201_vm3, %v529_v52 }
 0x104   : > { %v218_v54 = vpop.f32.mrf.mxu0 }
 0x105   : > { %v239_v1 = vadd.f32 %v238_v55, %v218_v54 }
 0x10c   : > { %v220_v57 = vpop.f32.mrf.mxu0 }
 0x10d   : > { %v241_v8 = vadd.f32 %v240_v60, %v220_v57 }
 0x10e   : > { %v262_v56 = vpop.f32.mrf.mxu2 }
 0x10f   : > { %v267_v3 = vadd.f32 %v262_v56, %v239_v1 }
 0x114   : > { %v313_v62 = vpop.f32.mrf.mxu0  ;;  %v339_v0 = vpop.f32.mrf.mxu1 }
 0x116   : > { %v264_v58 = vpop.f32.mrf.mxu2  ;;  %v288_v59 = vpop.f32.mrf.mxu3 }
 0x117   : > { %v293_v4 = vadd.f32 %v288_v59, %v267_v3  ;;  %v268_v11 = vadd.f32 %v264_v58, %v241_v8 }
 0x119   : > { %v318_v9 = vadd.f32 %v313_v62, %v293_v4 }
 0x11b   : > { %v344_v12 = vadd.f32 %v339_v0, %v318_v9 }
 0x11c   : > { %v315_v5 = vpop.f32.mrf.mxu0  ;;  %v341_v7 = vpop.f32.mrf.mxu1 }
 0x11e   : > { %v290_v61 = vpop.f32.mrf.mxu3  ;;  %v365_v63 = vpop.f32.mrf.mxu2 }
 0x11f   : > { %v294_v13 = vadd.f32 %v290_v61, %v268_v11  ;;  %v370_v16 = vadd.f32 %v365_v63, %v344_v12 }
 0x121   : > { %v319_v18 = vadd.f32 %v315_v5, %v294_v13 }
 0x123   : > { %v345_v21 = vadd.f32 %v341_v7, %v319_v18 }
 0x126   : > { %v391_v2 = vpop.f32.mrf.mxu3  ;;  %v367_v6 = vpop.f32.mrf.mxu2 }
 0x127   : > { %v396_v19 = vadd.f32 %v391_v2, %v370_v16  ;;  %v371_v23 = vadd.f32 %v367_v6, %v345_v21 }
 0x128   : > { %v417_v14 = vpop.f32.mrf.mxu0 }
 0x129   : > { %v422_v22 = vadd.f32 %v417_v14, %v396_v19 }
 0x12e   : > { %v393_v10 = vpop.f32.mrf.mxu3 }
 0x12f   : > { %v397_v28 = vadd.f32 %v393_v10, %v371_v23 }
 0x130   : > { %v419_v24 = vpop.f32.mrf.mxu0 }
 0x131   : > { %v423_v31 = vadd.f32 %v419_v24, %v397_v28 }
 0x132   : > { %v469_v15 = vpop.f32.mrf.mxu2 }
 0x134   : > { %v443_v17 = vpop.f32.mrf.mxu1 }
 0x135   : > { %v448_v25 = vadd.f32 %v443_v17, %v422_v22 }
 0x136   : > { %v495_v20 = vpop.f32.mrf.mxu3 }
 0x137   : > { %v474_v30 = vadd.f32 %v469_v15, %v448_v25 }
 0x139   : > { %v500_v32 = vadd.f32 %v495_v20, %v474_v30 }
 0x13a   : > { %v471_v26 = vpop.f32.mrf.mxu2 }
 0x13c   : > { %v445_v27 = vpop.f32.mrf.mxu1 }
 0x13d   : > { %v449_v33 = vadd.f32 %v445_v27, %v423_v31 }
 0x13e   : > { %v497_v29 = vpop.f32.mrf.mxu3 }
 0x13f   : > { %v475_v38 = vadd.f32 %v471_v26, %v449_v33 }
 0x141   : > { %v501_v42 = vadd.f32 %v497_v29, %v475_v38 }
 0x142   : > { %v573_v37 = vpop.f32.mrf.mxu2 }
 0x144   : > { %v521_v34 = vpop.f32.mrf.mxu0  ;;  %v547_v35 = vpop.f32.mrf.mxu1 }
 0x145   : > { %v526_v36 = vadd.f32 %v521_v34, %v500_v32 }
 0x146   : > { %v599_v40 = vpop.f32.mrf.mxu3 }
 0x147   : > { %v552_v39 = vadd.f32 %v547_v35, %v526_v36 }
 0x149   : > { %v578_v41 = vadd.f32 %v573_v37, %v552_v39 }
 0x14a   : > { %v575_v48 = vpop.f32.mrf.mxu2 }
 0x14b   : > { %v604_v43 = vadd.f32 %v599_v40, %v578_v41 }
 0x14c   : > { %v523_v44 = vpop.f32.mrf.mxu0  ;;  %v549_v46 = vpop.f32.mrf.mxu1 }
 0x14d   : > { %607 = vst.msk [vmem:[%s175_s16] sm:$0xff] %vm606_vm4, %v604_v43  ;;  %v527_v45 = vadd.f32 %v523_v44, %v501_v42 }
 0x14e   : > { %v601_v50 = vpop.f32.mrf.mxu3 }
 0x14f   : > { %v553_v47 = vadd.f32 %v549_v46, %v527_v45 }
 0x151   : > { %v579_v49 = vadd.f32 %v575_v48, %v553_v47 }
 0x153   : > { %v605_v51 = vadd.f32 %v601_v50, %v579_v49 }
 0x155   : > { %608 = vst.msk [vmem:[%s179_s13] sm:$0xff] %vm606_vm4, %v605_v51 }
 0x156 PF: > { %s14_s12 = sadd.s32 1, %s758_s12  }
 0x157   : > { %p11_p4 = scmp.ge.s32.totalorder %s14_s12, 4  }
 0x159   :  { %13 = sbr.rel (!%p11_p4) target bundleno = 1 (0x1), region = 70 }

// kernel: _lambda_.5
= control target key start
LH: loop header
LB: loop body
LE: loop exit
PB: predicated region body
PF: predicated region fallthrough
CT: control target
= control target key end

     0   :  { %s630_s12 = smov 0   ;;  %s759_s0 = inlined_call_operand.vmem [shape: f32[2,8,8,9], index: 0, kind: input, shape index: {}]   ;;  %s760_s1 = inlined_call_operand.vmem [shape: bf16[8,18], index: 1, kind: input, shape index: {}]   ;;  %s761_s2 = inlined_call_operand.vmem [shape: bf16[19,8], index: 2, kind: input, shape index: {}]   ;;  %s762_s3 = inlined_call_operand.vmem [shape: bf16[2,8,19,18], index: 3, kind: output, shape index: {}]  }
   0x1 LB: > { %s555_s13 = sadd.s32 4294967295, %s608_s12   ;;  %p559_p0 = scmp.ge.s32.totalorder %s608_s12, 1  ;;  %s608_s12 = sphi %s630_s12, %s13_s12  }
   0x2   : > { %p137_p1 = scmp.lt.s32.totalorder %s608_s12, 3 }
   0x4   : > { %p138_p2 = pnand %p559_p0, %p137_p1 }
   0x5   : > { %p161_p3 = scmp.lt.s32.totalorder (!%p138_p2), %s555_s13, 1 }
   0x6   : > { %141 = sbr.rel (%p138_p2) target bundleno = 357 (0x165), region = 32 }
   0xb   : > { %v192_v0 = vld [vmem:[%s760_s1] sm:$0xf]  ;;  %vm206_vm0 = vcmask 1043456   ;;  %s766_s13 = smov (!%p161_p3, %s555_s13), 1  ;;  %vm193_vm1 = vcmask 64512   ;;  %vm456_vm2 = vcmask 142336  }
   0xc   : > { %v208_v1 = vsel %vm206_vm0, %v192_v0, 0  ;;  %s589_s16 = sshll.u32 %s766_s13, 6  ;;  %v249_v22 = vld [vmem:[%s761_s2 + $0x8] sm:$0x3]  ;;  %v590_v28 = vld [vmem:[%s761_s2] sm:$0xff]  ;;  %s593_s24 = smul.u32 96, %s766_s13 }
   0xd   : > { %217 = vmatpush.bf16.msra.mxu0 %v208_v1  ;;  %591 = vmatpush.bf16.msra.mxu2 %v208_v1  ;;  %s165_s19 = scalar_lea.vmem %s759_s0, %s589_s16  ;;  %v255_v23 = vunpack.c.l.b16 %v249_v22  ;;  %vm459_vm3 = vcmask 140288   ;;  %vm460_vm4 = vsmask.f32 1280 }
   0xe   : > { %v172_v2 = vld [vmem:[%s165_s19] sm:$0xff]  ;;  %v173_v3 = vld [vmem:[%s165_s19 + $0x8] sm:$0xff]  ;;  %v178_v6 = vld [vmem:[%s165_s19 + $0x30] sm:$0xff]  ;;  %s686_s27 = scalar_lea.vmem %s762_s3, %s593_s24 }
   0xf   : > { %v180_v4 = vmax.f32 %v172_v2, 0.0  ;;  %v181_v5 = vmax.f32 %v173_v3, 0.0  ;;  %v179_v7 = vld [vmem:[%s165_s19 + $0x38] sm:$0xff]  ;;  %v186_v8 = vmax.f32 %v178_v6, 0.0  ;;  %v174_v12 = vld [vmem:[%s165_s19 + $0x10] sm:$0xff]  ;;  %v176_v17 = vld [vmem:[%s165_s19 + $0x20] sm:$0xff]  ;;  %v257_v27 = vpack.c.b16 %v255_v23, %v255_v23 }
  0x10   : > { %v187_v9 = vmax.f32 %v179_v7, 0.0  ;;  %v175_v13 = vld [vmem:[%s165_s19 + $0x18] sm:$0xff]  ;;  %v182_v14 = vmax.f32 %v174_v12, 0.0  ;;  %v177_v18 = vld [vmem:[%s165_s19 + $0x28] sm:$0xff]  ;;  %v184_v19 = vmax.f32 %v176_v17, 0.0  ;;  %vm690_vm5 = vmand %vm459_vm3, %vm460_vm4 }
  0x11   : > { %v188_v10 = vpack.c.bf16 %v181_v5, %v180_v4  ;;  %v183_v15 = vmax.f32 %v175_v13, 0.0  ;;  %v185_v20 = vmax.f32 %v177_v18, 0.0  ;;  %v462_v54 = vld [vmem:[%s686_s27 + $0x8] sm:$0x3]  ;;  %v472_v18 = vld [vmem:[%s686_s27 + $0x20] sm:$0x3] }
  0x12   : > { %v191_v11 = vpack.c.bf16 %v187_v9, %v186_v8  ;;  %v477_v22 = vld [vmem:[%s686_s27 + $0x2c] sm:$0x3] }
  0x13   : > { %563 = vmatmul.msk.bf16.vlgmr.msra.gmra.mxu0 %vm193_vm1, %v188_v10  ;;  %v189_v16 = vpack.c.bf16 %v183_v15, %v182_v14  ;;  %v190_v21 = vpack.c.bf16 %v185_v20, %v184_v19  ;;  %v467_v10 = vld [vmem:[%s686_s27 + $0x14] sm:$0x3] }
  0x14   : > { %566 = vmatmul.msk.bf16.vlgmr.msra.gmra.mxu2 %vm193_vm1, %v191_v11 }
  0x23   : > { %564 = vmatmul.msk.bf16.gmra.mxu0 %vm193_vm1, %v189_v16 }
  0x33   : > { %565 = vmatmul.msk.bf16.gmra.mxu0 %vm193_vm1, %v190_v21 }
  0x90   : > { %v219_v24 = vpop.f32.mrf.mxu0 }
  0x91   : > { %v239_v25 = vpack.c.bf16 %v219_v24, %v219_v24 }
  0x93   : > { %v265_v26 = vsel %vm206_vm0, %v239_v25, 0 }
  0x94   : > { %274 = vmatpush.bf16.msra.mxu1 %v265_v26  ;;  %592 = vmatpush.bf16.msra.mxu3 %v265_v26 }
  0x97   : > { %572 = vmatmul.msk.bf16.vlgmr.msra.gmra.mxu3 %vm193_vm1, %v257_v27  ;;  %v234_v29 = vpop.f32.mrf.mxu2  ;;  %571 = vmatmul.msk.bf16.vlgmr.msra.gmra.mxu1 %vm193_vm1, %v590_v28 }
  0x98   : > { %v221_v30 = vpop.f32.mrf.mxu0  ;;  %v245_v31 = vpack.c.bf16 %v234_v29, %v234_v29 }
  0x99   : > { %v240_v32 = vpack.c.bf16 %v221_v30, %v221_v30 }
  0x9a   : > { %v391_v33 = vsel %vm206_vm0, %v245_v31, 0 }
  0x9b   : > { %v286_v34 = vsel %vm206_vm0, %v240_v32, 0  ;;  %400 = vmatpush.bf16.msrb.mxu0 %v391_v33 }
  0x9c   : > { %295 = vmatpush.bf16.msrb.mxu2 %v286_v34 }
  0x9e   : > { %583 = vmatmul.msk.bf16.vlgmr.msrb.gmra.mxu0 %vm193_vm1, %v590_v28 }
  0x9f   : > { %573 = vmatmul.msk.bf16.vlgmr.msrb.gmra.mxu2 %vm193_vm1, %v590_v28  ;;  %v236_v38 = vpop.f32.mrf.mxu2 }
  0xa0   : > { %v224_v35 = vpop.f32.mrf.mxu0  ;;  %v246_v39 = vpack.c.bf16 %v236_v38, %v236_v38 }
  0xa1   : > { %v241_v36 = vpack.c.bf16 %v224_v35, %v224_v35 }
  0xa2   : > { %v412_v42 = vsel %vm206_vm0, %v246_v39, 0 }
  0xa3   : > { %v307_v37 = vsel %vm206_vm0, %v241_v36, 0 }
  0xa4   : > { %316 = vmatpush.bf16.msrb.mxu3 %v307_v37 }
  0xa7   : > { %575 = vmatmul.msk.bf16.vlgmr.msrb.gmra.mxu3 %vm193_vm1, %v590_v28 }
  0xa8   : > { %v226_v40 = vpop.f32.mrf.mxu0 }
  0xa9   : > { %v242_v41 = vpack.c.bf16 %v226_v40, %v226_v40 }
  0xab   : > { %v328_v43 = vsel %vm206_vm0, %v242_v41, 0 }
  0xac   : > { %337 = vmatpush.bf16.msrb.mxu1 %v328_v43 }
  0xae   : > { %584 = vmatmul.msk.bf16.gmra.mxu0 %vm193_vm1, %v257_v27 }
  0xaf   : > { %577 = vmatmul.msk.bf16.vlgmr.msrb.gmra.mxu1 %vm193_vm1, %v590_v28  ;;  %574 = vmatmul.msk.bf16.gmra.mxu2 %vm193_vm1, %v257_v27 }
  0xb0   : > { %421 = vmatpush.bf16.msra.mxu1 %v412_v42  ;;  %v229_v44 = vpop.f32.mrf.mxu0  ;;  %v482_v42 = vld [vmem:[%s686_s27 + $0x38] sm:$0x3] }
  0xb1   : > { %v243_v45 = vpack.c.bf16 %v229_v44, %v229_v44 }
  0xb3   : > { %v349_v46 = vsel %vm206_vm0, %v243_v45, 0 }
  0xb4   : > { %358 = vmatpush.bf16.msra.mxu2 %v349_v46 }
  0xb7   : > { %576 = vmatmul.msk.bf16.gmra.mxu3 %vm193_vm1, %v257_v27 }
  0xb8   : > { %v231_v47 = vpop.f32.mrf.mxu0 }
  0xb9   : > { %v244_v48 = vpack.c.bf16 %v231_v47, %v231_v47 }
  0xbb   : > { %v370_v49 = vsel %vm206_vm0, %v244_v48, 0 }
  0xbc   : > { %379 = vmatpush.bf16.msra.mxu3 %v370_v49  ;;  %v487_v49 = vld [vmem:[%s686_s27 + $0x44] sm:$0x3] }
  0xbf   : > { %578 = vmatmul.msk.bf16.gmra.mxu1 %vm193_vm1, %v257_v27  ;;  %579 = vmatmul.msk.bf16.vlgmr.msra.gmra.mxu2 %vm193_vm1, %v590_v28 }
  0xc7   : > { %581 = vmatmul.msk.bf16.vlgmr.msra.gmra.mxu3 %vm193_vm1, %v590_v28 }
  0xcf   : > { %585 = vmatmul.msk.bf16.vlgmr.msra.gmra.mxu1 %vm193_vm1, %v590_v28  ;;  %580 = vmatmul.msk.bf16.gmra.mxu2 %vm193_vm1, %v257_v27 }
  0xd7   : > { %582 = vmatmul.msk.bf16.gmra.mxu3 %vm193_vm1, %v257_v27 }
  0xdf   : > { %586 = vmatmul.msk.bf16.gmra.mxu1 %vm193_vm1, %v257_v27  ;;  %v492_v27 = vld [vmem:[%s686_s27 + $0x50] sm:$0x3] }
 0x114   : > { %v276_v50 = vpop.f32.mrf.mxu1 }
 0x115   : > { %v432_v51 = vpack.c.bf16 %v276_v50, %v276_v50 }
 0x117   : > { %457 = vst.msk [vmem:[%s686_s27] sm:$0xf] %vm456_vm2, %v432_v51 }
 0x11a   : > { %v281_v52 = vpop.f32.mrf.mxu3 }
 0x11b   : > { %v434_v55 = vpack.c.bf16 %v281_v52, %v281_v52  ;;  %v402_v62 = vpop.f32.mrf.mxu0 }
 0x11c   : > { %v278_v56 = vpop.f32.mrf.mxu1  ;;  %v450_v6 = vpack.c.bf16 %v402_v62, %v402_v62 }
 0x11d   : > { %v463_v57 = vsel %vm690_vm5, %v434_v55, %v462_v54  ;;  %v433_v58 = vpack.c.bf16 %v278_v56, %v278_v56  ;;  %v497_v54 = vld [vmem:[%s686_s27 + $0x5c] sm:$0x3] }
 0x11e   : > { %464 = vst [vmem:[%s686_s27 + $0x8] sm:$0x3] %v463_v57 }
 0x11f   : > { %458 = vst.msk [vmem:[%s686_s27 + $0x4] sm:$0xf] %vm456_vm2, %v433_v58 }
 0x120   : > { %490 = vst.msk [vmem:[%s686_s27 + $0x48] sm:$0xf] %vm456_vm2, %v450_v6 }
 0x122   : > { %v283_v59 = vpop.f32.mrf.mxu3  ;;  %v297_v60 = vpop.f32.mrf.mxu2 }
 0x123   : > { %v435_v61 = vpack.c.bf16 %v297_v60, %v297_v60  ;;  %v404_v4 = vpop.f32.mrf.mxu0 }
 0x124   : > { %v451_v7 = vpack.c.bf16 %v404_v4, %v404_v4 }
 0x125   : > { %465 = vst.msk [vmem:[%s686_s27 + $0xc] sm:$0xf] %vm456_vm2, %v435_v61 }
 0x126   : > { %491 = vst.msk [vmem:[%s686_s27 + $0x4c] sm:$0xf] %vm456_vm2, %v451_v7 }
 0x12a   : > { %v318_v63 = vpop.f32.mrf.mxu3  ;;  %v299_v0 = vpop.f32.mrf.mxu2 }
 0x12b   : > { %v438_v1 = vpack.c.bf16 %v318_v63, %v318_v63  ;;  %v436_v2 = vpack.c.bf16 %v299_v0, %v299_v0  ;;  %v407_v14 = vpop.f32.mrf.mxu0 }
 0x12c   : > { %v339_v3 = vpop.f32.mrf.mxu1  ;;  %v452_v26 = vpack.c.bf16 %v407_v14, %v407_v14 }
 0x12d   : > { %470 = vst.msk [vmem:[%s686_s27 + $0x18] sm:$0xf] %vm456_vm2, %v438_v1  ;;  %v441_v5 = vpack.c.bf16 %v339_v3, %v339_v3 }
 0x12e   : > { %466 = vst.msk [vmem:[%s686_s27 + $0x10] sm:$0xf] %vm456_vm2, %v436_v2  ;;  %v493_v29 = vsel %vm690_vm5, %v452_v26, %v492_v27 }
 0x12f   : > { %475 = vst.msk [vmem:[%s686_s27 + $0x24] sm:$0xf] %vm456_vm2, %v441_v5 }
 0x130   : > { %494 = vst [vmem:[%s686_s27 + $0x50] sm:$0x3] %v493_v29 }
 0x132   : > { %v320_v8 = vpop.f32.mrf.mxu3  ;;  %v302_v9 = vpop.f32.mrf.mxu2 }
 0x133   : > { %v439_v11 = vpack.c.bf16 %v320_v8, %v320_v8  ;;  %v437_v12 = vpack.c.bf16 %v302_v9, %v302_v9  ;;  %v409_v23 = vpop.f32.mrf.mxu0 }
 0x134   : > { %v341_v13 = vpop.f32.mrf.mxu1 }
 0x135   : > { %471 = vst.msk [vmem:[%s686_s27 + $0x1c] sm:$0xf] %vm456_vm2, %v439_v11  ;;  %v442_v15 = vpack.c.bf16 %v341_v13, %v341_v13  ;;  %v468_v16 = vsel %vm690_vm5, %v437_v12, %v467_v10 }
 0x136   : > { %469 = vst [vmem:[%s686_s27 + $0x14] sm:$0x3] %v468_v16 }
 0x137   : > { %476 = vst.msk [vmem:[%s686_s27 + $0x28] sm:$0xf] %vm456_vm2, %v442_v15 }
 0x13a   : > { %v323_v17 = vpop.f32.mrf.mxu3  ;;  %v304_v19 = vpop.f32.mrf.mxu2 }
 0x13b   : > { %v440_v20 = vpack.c.bf16 %v323_v17, %v323_v17 }
 0x13c   : > { %v344_v21 = vpop.f32.mrf.mxu1 }
 0x13d   : > { %v473_v24 = vsel %vm690_vm5, %v440_v20, %v472_v18  ;;  %v443_v25 = vpack.c.bf16 %v344_v21, %v344_v21 }
 0x13e   : > { %474 = vst [vmem:[%s686_s27 + $0x20] sm:$0x3] %v473_v24 }
 0x13f   : > { %v478_v28 = vsel %vm690_vm5, %v443_v25, %v477_v22 }
 0x140   : > { %479 = vst [vmem:[%s686_s27 + $0x2c] sm:$0x3] %v478_v28 }
 0x142   : > { %v325_v30 = vpop.f32.mrf.mxu3  ;;  %v360_v31 = vpop.f32.mrf.mxu2 }
 0x143   : > { %v444_v32 = vpack.c.bf16 %v360_v31, %v360_v31 }
 0x144   : > { %v346_v33 = vpop.f32.mrf.mxu1 }
 0x145   : > { %480 = vst.msk [vmem:[%s686_s27 + $0x30] sm:$0xf] %vm456_vm2, %v444_v32 }
 0x14a   : > { %v381_v34 = vpop.f32.mrf.mxu3  ;;  %v362_v35 = vpop.f32.mrf.mxu2 }
 0x14b   : > { %v447_v36 = vpack.c.bf16 %v381_v34, %v381_v34  ;;  %v445_v37 = vpack.c.bf16 %v362_v35, %v362_v35 }
 0x14c   : > { %v423_v38 = vpop.f32.mrf.mxu1 }
 0x14d   : > { %485 = vst.msk [vmem:[%s686_s27 + $0x3c] sm:$0xf] %vm456_vm2, %v447_v36  ;;  %v453_v39 = vpack.c.bf16 %v423_v38, %v423_v38 }
 0x14e   : > { %481 = vst.msk [vmem:[%s686_s27 + $0x34] sm:$0xf] %vm456_vm2, %v445_v37 }
 0x14f   : > { %495 = vst.msk [vmem:[%s686_s27 + $0x54] sm:$0xf] %vm456_vm2, %v453_v39 }
 0x152   : > { %v383_v40 = vpop.f32.mrf.mxu3  ;;  %v365_v41 = vpop.f32.mrf.mxu2 }
 0x153   : > { %v448_v43 = vpack.c.bf16 %v383_v40, %v383_v40  ;;  %v446_v44 = vpack.c.bf16 %v365_v41, %v365_v41 }
 0x154   : > { %v425_v45 = vpop.f32.mrf.mxu1 }
 0x155   : > { %486 = vst.msk [vmem:[%s686_s27 + $0x40] sm:$0xf] %vm456_vm2, %v448_v43  ;;  %v454_v46 = vpack.c.bf16 %v425_v45, %v425_v45  ;;  %v483_v47 = vsel %vm690_vm5, %v446_v44, %v482_v42 }
 0x156   : > { %484 = vst [vmem:[%s686_s27 + $0x38] sm:$0x3] %v483_v47 }
 0x157   : > { %496 = vst.msk [vmem:[%s686_s27 + $0x58] sm:$0xf] %vm456_vm2, %v454_v46 }
 0x15a   : > { %v386_v48 = vpop.f32.mrf.mxu3  ;;  %v367_v50 = vpop.f32.mrf.mxu2 }
 0x15b   : > { %v449_v51 = vpack.c.bf16 %v386_v48, %v386_v48 }
 0x15c   : > { %v428_v52 = vpop.f32.mrf.mxu1 }
 0x15d   : > { %v488_v55 = vsel %vm690_vm5, %v449_v51, %v487_v49  ;;  %v455_v56 = vpack.c.bf16 %v428_v52, %v428_v52 }
 0x15e   : > { %489 = vst [vmem:[%s686_s27 + $0x44] sm:$0x3] %v488_v55 }
 0x15f   : > { %v498_v57 = vsel %vm690_vm5, %v455_v56, %v497_v54 }
 0x160   : > { %499 = vst [vmem:[%s686_s27 + $0x5c] sm:$0x3] %v498_v57 }
 0x162   : > { %v388_v58 = vpop.f32.mrf.mxu3 }
 0x164   : > { %v430_v59 = vpop.f32.mrf.mxu1 }
 0x165 PF: > { %s13_s12 = sadd.s32 1, %s608_s12  }
 0x166   : > { %p10_p4 = scmp.ge.s32.totalorder %s13_s12, 4  }
 0x168   :  { %12 = sbr.rel (!%p10_p4) target bundleno = 1 (0x1), region = 62 }

// kernel: _lambda_.7
= control target key start
LH: loop header
LB: loop body
LE: loop exit
PB: predicated region body
PF: predicated region fallthrough
CT: control target
= control target key end

     0   :  { %8 = vsyncpa [#allocation3], 0  ;;  %s523_s0 = inlined_call_operand.vmem [shape: f32[2,4,288], index: 0, kind: input, shape index: {}]   ;;  %s524_s1 = inlined_call_operand.vmem [shape: f32[4], index: 1, kind: input, shape index: {}]   ;;  %s525_s2 = inlined_call_operand.vmem [shape: f32[4], index: 2, kind: input, shape index: {}]   ;;  %s526_s3 = inlined_call_operand.vmem [shape: f32[2,4,288], index: 3, kind: output, shape index: {}]  }
   0x1   :  { %9 = vsyncpa [#allocation5], 0  ;;  %s473_s12 = smov 0  }
   0x2 LB: > { %s353_s13 = sadd.s32 4294967295, %s449_s12   ;;  %p355_p0 = scmp.ge.s32.totalorder %s449_s12, 1  ;;  %s449_s12 = sphi %s473_s12, %s15_s12  }
   0x3   : > { %p114_p1 = scmp.lt.s32.totalorder %s449_s12, 3  ;;  %s126_s16 = sshll.u32 %s524_s1, 4  ;;  %s127_s16 = int_to_ptr.vmem [resolvable:$true] %s126_s16 }
   0x4   : > { %p391_p3 = scmp.eq.s32.totalorder %s353_s13, 0  ;;  %s136_s19 = sshll.u32 %s525_s2, 4  ;;  %s137_s19 = int_to_ptr.vmem [resolvable:$true] %s136_s19 }
   0x5   : > { %p115_p2 = pnand %p355_p0, %p114_p1  ;;  %s451_s20 = smov [#allocation2]  }
   0x6   : > { %s452_s21 = smov [#allocation4]  }
   0x7   : > { %p384_p4 = pneg %p115_p2 }
   0x8   : > { %157 = sbr.rel (%p115_p2) target bundleno = 60 (0x3c), region = 32 }
   0x9   : > { %p385_p5 = pnand %p391_p3, %p384_p4 }
   0xb   : > { %387 = dma.vmem_to_smem (!%p385_p5), %s127_s16, 16, %s451_s20, [#allocation3]  }
   0xc   : > { %390 = dma.vmem_to_smem (!%p385_p5), %s137_s19, 16, %s452_s21, [#allocation5]  }
   0xd   : > { %440 = dma.done.wait (%p391_p3), [#allocation3], 16  }
   0xe   : > { %442 = vsyncadd (%p391_p3), [#allocation3], 4294967280 }
   0xf   : > { %444 = dma.done.wait (%p391_p3), [#allocation5], 16  }
  0x10   : > { %446 = vsyncadd (%p391_p3), [#allocation5], 4294967280 }
  0x11   : > { %169 = sfence }
  0x12   : > { %p188_p6 = scmp.lt.s32.totalorder %s353_s13, 1  ;;  %s200_s22 = sld [smem:[#allocation2]]  ;;  %v220_v12 = vlaneseq  ;;  %vm213_vm1 = vcmask 1040384   ;;  %vm215_vm2 = vcmask 1042434   ;;  %vm217_vm3 = vcmask 1041408  }
  0x13   : > { %s364_s23 = sld [smem:[#allocation2 + $0x1]] }
  0x14   : > { %s530_s13 = smov (!%p188_p6, %s353_s13), 1  ;;  %s365_s24 = sld [smem:[#allocation4 + $0x1]]  ;;  %vm503_vm0 = vcmp.lt.s32.totalorder %v220_v12, 288 }
  0x15   : > { %s375_s25 = smul.u32 12, %s530_s13  ;;  %s367_s26 = sld [smem:[#allocation2 + $0x2]] }
  0x16   : > { %s500_s30 = sld [smem:[#allocation4 + $0x2]] }
  0x17   : > { %s192_s29 = scalar_lea.vmem %s523_s0, %s375_s25  ;;  %s204_s4 = sld [smem:[#allocation4]] }
  0x18   : > { %v198_v0 = vld [vmem:[%s192_s29] sm:$0xff]  ;;  %v199_v2 = vld [vmem:[%s192_s29 + $0x8] sm:$0xf]  ;;  %v201_v5 = vstv %s200_s22  ;;  %s370_s5 = sld [smem:[#allocation2 + $0x3]]  ;;  %s197_s9 = scalar_lea.vmem %s526_s3, %s375_s25 }
  0x19   : > { %v226_v1 = vstv %s364_s23  ;;  %v202_v10 = vmul.f32 %v201_v5, %v198_v0  ;;  %v203_v11 = vmul.f32 %v201_v5, %v199_v2  ;;  %s371_s6 = sld [smem:[#allocation4 + $0x3]] }
  0x1a   : > { %v227_v3 = vmul.f32 %v226_v1, %v198_v0  ;;  %v228_v4 = vmul.f32 %v226_v1, %v199_v2  ;;  %v230_v6 = vstv %s365_s24 }
  0x1b   : > { %v243_v9 = vstv %s367_s26 }
  0x1c   : > { %v231_v7 = vadd.f32 %v230_v6, %v227_v3  ;;  %v232_v8 = vadd.f32 %v230_v6, %v228_v4  ;;  %v244_v13 = vmul.f32 %v243_v9, %v198_v0  ;;  %v247_v14 = vstv %s500_s30 }
  0x1d   : > { %v245_v15 = vmul.f32 %v243_v9, %v199_v2  ;;  %v205_v16 = vstv %s204_s4 }
  0x1e   : > { %235 = vst [vmem:[#allocation1] sm:$0xff] %v231_v7  ;;  %v206_v17 = vadd.f32 %v205_v16, %v202_v10  ;;  %v207_v18 = vadd.f32 %v205_v16, %v203_v11  ;;  %v248_v20 = vadd.f32 %v247_v14, %v244_v13  ;;  %v260_v28 = vstv %s370_s5 }
  0x1f   : > { %236 = vst [vmem:[#allocation1 + $0x8] sm:$0xff] %v232_v8  ;;  %v249_v24 = vadd.f32 %v247_v14, %v245_v15  ;;  %v261_v30 = vmul.f32 %v260_v28, %v198_v0  ;;  %v264_v31 = vstv %s371_s6  ;;  %v262_v32 = vmul.f32 %v260_v28, %v199_v2 }
  0x20   : > { %v210_v21 = vrot.slane %v206_v17, 3  ;;  %v211_v22 = vrot.slane %v207_v18, 6  ;;  %v212_v23 = vrot.slane %v207_v18, 1 }
  0x21   : > { %v265_v33 = vadd.f32 %v264_v31, %v261_v30  ;;  %v266_v34 = vadd.f32 %v264_v31, %v262_v32 }
  0x22   : > { %v214_v26 = vsel %vm213_vm1, %v206_v17, %v210_v21  ;;  %v216_v27 = vsel %vm215_vm2, %v211_v22, %v212_v23 }
  0x23   : > { %v218_v29 = vsel %vm217_vm3, %v214_v26, %v216_v27 }
  0x24   : > { %224 = vst.msk [vmem:[%s197_s9] ss:$4 sm:$0x7] %vm503_vm0, %v218_v29 }
  0x26   : > { %v238_v25 = vld [vmem:[#allocation1 + $0x1] ss:$4 sm:$0xff] }
  0x27   : > { %366 = vst.msk [vmem:[%s197_s9 + $0x1] ss:$4 sm:$0x7] %vm503_vm0, %v238_v25 }
  0x28   : > { %252 = vst [vmem:[#allocation1] sm:$0xff] %v248_v20 }
  0x29   : > { %253 = vst [vmem:[#allocation1 + $0x8] sm:$0xff] %v249_v24 }
  0x30   : > { %v255_v35 = vld [vmem:[#allocation1 + $0x2] ss:$4 sm:$0xff] }
  0x31   : > { %369 = vst.msk [vmem:[%s197_s9 + $0x2] ss:$4 sm:$0x7] %vm503_vm0, %v255_v35 }
  0x32   : > { %269 = vst [vmem:[#allocation1] sm:$0xff] %v265_v33 }
  0x33   : > { %270 = vst [vmem:[#allocation1 + $0x8] sm:$0xff] %v266_v34 }
  0x3a   : > { %v272_v36 = vld [vmem:[#allocation1 + $0x3] ss:$4 sm:$0xff] }
  0x3b   : > { %372 = vst.msk [vmem:[%s197_s9 + $0x3] ss:$4 sm:$0x7] %vm503_vm0, %v272_v36 }
  0x3c PF: > { %s15_s12 = sadd.s32 1, %s449_s12  }
  0x3d   : > { %p12_p7 = scmp.ge.s32.totalorder %s15_s12, 4  }
  0x3f   :  { %14 = sbr.rel (!%p12_p7) target bundleno = 2 (0x2), region = 77 }
  0x44   :  { %297 = vsyncpa [#allocation3], 1 }
  0x45   :  { %299 = vsyncpa [#allocation3 + $0x1], 1 }
  0x46   :  { %300 = vsyncpa [#allocation5], 1 }

// kernel: _lambda_.6
= control target key start
LH: loop header
LB: loop body
LE: loop exit
PB: predicated region body
PF: predicated region fallthrough
CT: control target
= control target key end

     0   :  { %s1026_s15 = smov 0   ;;  %s1179_s0 = inlined_call_operand.vmem [shape: bf16[2,8,342], index: 0, kind: input, shape index: {}]   ;;  %s1180_s1 = inlined_call_operand.vmem [shape: bf16[4,72], index: 1, kind: input, shape index: {}]   ;;  %s1181_s2 = inlined_call_operand.vmem [shape: f32[1,288], index: 2, kind: input, shape index: {}]   ;;  %s1182_s3 = inlined_call_operand.vmem [shape: f32[2,4,288], index: 3, kind: output, shape index: {0}]   ;;  %s1183_s4 = inlined_call_operand.vmem [shape: f32[4,2], index: 4, kind: output, shape index: {1}]  }
   0x1 LB: > { %s1032_s16 = sadd.s32 4294967295, %s982_s15   ;;  %p917_p0 = scmp.ge.s32.totalorder %s982_s15, 1  ;;  %s982_s15 = sphi %s1026_s15, %s15_s15  }
   0x2   : > { %p160_p1 = scmp.lt.s32.totalorder %s982_s15, 3 }
   0x4   : > { %p161_p2 = pnand %p917_p0, %p160_p1 }
   0x5   : > { %p186_p3 = scmp.lt.s32.totalorder (!%p161_p2), %s1032_s16, 1  ;;  %s984_s24 = smov (!%p161_p2), 127  }
   0x6   : > { %164 = sbr.rel (%p161_p2) target bundleno = 516 (0x204), region = 32  ;;  %s985_s25 = smov (!%p161_p2), 126  }
   0x7   : > { %s986_s26 = smov (!%p161_p2), 120   ;;  %s987_s27 = smov (!%p161_p2), 112  }
   0x8   : > { %s988_s28 = smov (!%p161_p2), 110   ;;  %s989_s29 = smov (!%p161_p2), 104  }
   0x9   : > { %s990_s30 = smov (!%p161_p2), 109   ;;  %s991_s5 = smov (!%p161_p2), 96  }
   0xa   : > { %s992_s6 = smov (!%p161_p2), 108   ;;  %s993_s7 = smov (!%p161_p2), 92  }
   0xb   : > { %v1040_v0 = vld [vmem:[%s1180_s1] sm:$0x3]  ;;  %s1044_s19 = scalar_select %p186_p3, %s1032_s16, 1  ;;  %vm227_vm0 = vcmask 1043456   ;;  %vm223_vm1 = vcmask 64512   ;;  %vm337_vm2 = vcmask 1031168  }
   0xc   : > { %201 = vst [vmem:[#allocation1] ss:$4 sm:$0xff] %v1040_v0  ;;  %s994_s8 = smov 88   ;;  %s995_s9 = smov 80   ;;  %vm220_vm3 = vcmask 1039360   ;;  %vm405_vm4 = vcmask 900096  }
   0xd   : > { %s950_s20 = smul.u32 12, %s1044_s19  ;;  %s996_s10 = smov 91   ;;  %vm473_vm5 = vcmask 891904   ;;  %vm541_vm6 = vcmask 883712   ;;  %vm609_vm7 = vcmask 752640   ;;  %vm677_vm8 = vcmask 744448  }
   0xe   : > { %s997_s11 = smov 72   ;;  %s998_s12 = smov 90   ;;  %vm745_vm9 = vcmask 736256   ;;  %vm808_vm10 = vcmask 257024  }
   0xf   : > { %s190_s23 = scalar_lea.vmem %s1179_s0, %s950_s20  ;;  %s999_s13 = smov 64  }
  0x10   : > { %v198_v1 = vld [vmem:[%s190_s23 + $0x8] sm:$0xf]  ;;  %v197_v2 = vld [vmem:[%s190_s23] sm:$0xff]  ;;  %s195_s22 = scalar_lea.vmem %s1182_s3, %s950_s20  ;;  %p947_p4 = scmp.ne.s32.totalorder %s1032_s16, 0 }
  0x11   : > { %v210_v3 = vunpack.c.l.b16 %v198_v1  ;;  %v208_v4 = vunpack.c.l.b16 %v197_v2  ;;  %v209_v8 = vunpack.c.h.b16 %v197_v2 }
  0x13   : > { %v202_v5 = vld.sshfl [vmem:[#allocation1] sm:$0xff pattern:$0x73625140]  ;;  %v1053_v6 = vpack.c.b16 %v210_v3, %v210_v3  ;;  %v211_v7 = vpack.c.b16 %v208_v4, %v208_v4  ;;  %v1056_v9 = vpack.c.b16 %v209_v8, %v209_v8 }
  0x14   : > { %326 = vst [vmem:[#allocation1] ss:$4 sm:$0xff] %v1040_v0 }
  0x15   : > { %218 = vrot.lane.b32.xlu0 %v1053_v6, %s984_s24  ;;  %214 = vrot.lane.b32.xlu1 %v211_v7, %s984_s24  ;;  %v279_v16 = vsel %vm227_vm0, %v211_v7, 0  ;;  %v282_v29 = vsel %vm227_vm0, %v1056_v9, 0  ;;  %v285_v32 = vsel %vm227_vm0, %v1053_v6, 0 }
  0x16   : > { %331 = vrot.lane.b32.xlu2 %v211_v7, %s985_s25  ;;  %294 = vmatpush.bf16.msra.mxu3 %v279_v16 }
  0x19   : > { %923 = vmatmul.msk.bf16.vlgmr.msra.gmra.mxu3 %vm223_vm1, %v1040_v0 }
  0x1b   : > { %v327_v10 = vld.sshfl [vmem:[#allocation1] sm:$0xff pattern:$0x73625140] }
  0x1c   : > { %394 = vst [vmem:[#allocation1] ss:$4 sm:$0xff] %v1040_v0 }
  0x1d   : > { %204 = vrot.lane.b32.xlu0 %v202_v5, %s986_s26  ;;  %216 = vrot.lane.b32.xlu1 %v1056_v9, %s984_s24 }
  0x1e   : > { %333 = vrot.lane.b32.xlu2 %v1056_v9, %s985_s25 }
  0x23   : > { %v395_v11 = vld.sshfl [vmem:[#allocation1] sm:$0xff pattern:$0x73625140] }
  0x24   : > { %462 = vst [vmem:[#allocation1] ss:$4 sm:$0xff] %v1040_v0 }
  0x25   : > { %329 = vrot.lane.b32.xlu0 %v327_v10, %s987_s27  ;;  %335 = vrot.lane.b32.xlu1 %v1053_v6, %s985_s25 }
  0x26   : > { %401 = vrot.lane.b32.xlu2 %v1056_v9, %s988_s28 }
  0x2b   : > { %v463_v12 = vld.sshfl [vmem:[#allocation1] sm:$0xff pattern:$0x73625140] }
  0x2c   : > { %530 = vst [vmem:[#allocation1] ss:$4 sm:$0xff] %v1040_v0 }
  0x2d   : > { %403 = vrot.lane.b32.xlu0 %v1053_v6, %s988_s28  ;;  %397 = vrot.lane.b32.xlu1 %v395_v11, %s989_s29 }
  0x2e   : > { %399 = vrot.lane.b32.xlu2 %v211_v7, %s988_s28 }
  0x33   : > { %v531_v13 = vld.sshfl [vmem:[#allocation1] sm:$0xff pattern:$0x73625140] }
  0x34   : > { %598 = vst [vmem:[#allocation1] ss:$4 sm:$0xff] %v1040_v0 }
  0x35   : > { %471 = vrot.lane.b32.xlu0 %v1053_v6, %s990_s30  ;;  %465 = vrot.lane.b32.xlu1 %v463_v12, %s991_s5 }
  0x36   : > { %467 = vrot.lane.b32.xlu2 %v211_v7, %s990_s30 }
  0x3b   : > { %v599_v14 = vld.sshfl [vmem:[#allocation1] sm:$0xff pattern:$0x73625140] }
  0x3c   : > { %666 = vst [vmem:[#allocation1] ss:$4 sm:$0xff] %v1040_v0 }
  0x3d   : > { %469 = vrot.lane.b32.xlu0 %v1056_v9, %s990_s30  ;;  %535 = vrot.lane.b32.xlu1 %v211_v7, %s992_s6 }
  0x3e   : > { %537 = vrot.lane.b32.xlu2 %v1056_v9, %s992_s6 }
  0x43   : > { %v667_v15 = vld.sshfl [vmem:[#allocation1] sm:$0xff pattern:$0x73625140] }
  0x44   : > { %734 = vst [vmem:[#allocation1] ss:$4 sm:$0xff] %v1040_v0 }
  0x45   : > { %603 = vrot.lane.b32.xlu0 %v211_v7, %s993_s7  ;;  %605 = vrot.lane.b32.xlu1 %v1056_v9, %s993_s7 }
  0x46   : > { %533 = vrot.lane.b32.xlu2 %v531_v13, %s994_s8 }
  0x4b   : > { %v735_v18 = vld.sshfl [vmem:[#allocation1] sm:$0xff pattern:$0x73625140] }
  0x4d   : > { %601 = vrot.lane.b32.xlu0 %v599_v14, %s995_s9  ;;  %539 = vrot.lane.b32.xlu1 %v1053_v6, %s992_s6 }
  0x4e   : > { %607 = vrot.lane.b32.xlu2 %v1053_v6, %s993_s7 }
  0x55   : > { %673 = vrot.lane.b32.xlu0 %v1056_v9, %s996_s10  ;;  %675 = vrot.lane.b32.xlu1 %v1053_v6, %s996_s10 }
  0x56   : > { %669 = vrot.lane.b32.xlu2 %v667_v15, %s997_s11 }
  0x5d   : > { %671 = vrot.lane.b32.xlu0 %v211_v7, %s996_s10  ;;  %743 = vrot.lane.b32.xlu1 %v1053_v6, %s998_s12 }
  0x5e   : > { %737 = vrot.lane.b32.xlu2 %v735_v18, %s999_s13 }
  0x65   : > { %741 = vrot.lane.b32.xlu1 %v1056_v9, %s998_s12  ;;  %739 = vrot.lane.b32.xlu0 %v211_v7, %s998_s12 }
  0x70   : > { %v332_v17 = vpop.permute.xlu2 %331 }
  0x78   : > { %v334_v19 = vpop.permute.xlu2 %333 }
  0x79   : > { %v338_v20 = vsel %vm337_vm2, %v332_v17, %v334_v19 }
  0x7a   : > { %v344_v24 = vsel %vm227_vm0, %v338_v20, 0 }
  0x80   : > { %v402_v21 = vpop.permute.xlu2 %401 }
  0x87   : > { %v219_v22 = vpop.permute.xlu0 %218  ;;  %v215_v23 = vpop.permute.xlu1 %214 }
  0x88   : > { %v235_v25 = vsel %vm227_vm0, %v219_v22, 0  ;;  %v400_v26 = vpop.permute.xlu2 %399 }
  0x89   : > { %270 = vmatpush.bf16.msra.mxu2 %v235_v25  ;;  %v406_v33 = vsel %vm405_vm4, %v400_v26, %v402_v21 }
  0x8a   : > { %v412_v36 = vsel %vm227_vm0, %v406_v33, 0 }
  0x8d   : > { %359 = vmatpush.bf16.msrb.mxu2 %v344_v24 }
  0x8f   : > { %v205_v27 = vpop.permute.xlu0 %204  ;;  %v217_v28 = vpop.permute.xlu1 %216 }
  0x90   : > { %922 = vmatmul.msk.bf16.vlgmr.msra.gmra.mxu2 %vm223_vm1, %v205_v27  ;;  %v221_v30 = vsel %vm220_vm3, %v215_v23, %v217_v28  ;;  %v222_v31 = vsel %vm220_vm3, %v217_v28, %v219_v22  ;;  %v468_v42 = vpop.permute.xlu2 %467 }
  0x91   : > { %v229_v34 = vsel %vm227_vm0, %v221_v30, 0  ;;  %v232_v35 = vsel %vm227_vm0, %v222_v31, 0 }
  0x92   : > { %244 = vmatpush.bf16.msra.mxu0 %v229_v34  ;;  %257 = vmatpush.bf16.msra.mxu1 %v232_v35 }
  0x95   : > { %920 = vmatmul.msk.bf16.vlgmr.msra.gmra.mxu0 %vm223_vm1, %v205_v27  ;;  %921 = vmatmul.msk.bf16.vlgmr.msra.gmra.mxu1 %vm223_vm1, %v205_v27 }
  0x96   : > { %307 = vmatpush.bf16.msrb.mxu0 %v282_v29  ;;  %320 = vmatpush.bf16.msrb.mxu1 %v285_v32 }
  0x97   : > { %v330_v37 = vpop.permute.xlu0 %329  ;;  %v336_v38 = vpop.permute.xlu1 %335 }
  0x98   : > { %v350_v39 = vsel %vm227_vm0, %v336_v38, 0  ;;  %v339_v40 = vsel %vm337_vm2, %v334_v19, %v336_v38  ;;  %v538_v48 = vpop.permute.xlu2 %537 }
  0x99   : > { %v347_v41 = vsel %vm227_vm0, %v339_v40, 0 }
  0x9a   : > { %427 = vmatpush.bf16.msra.mxu1 %v412_v36  ;;  %385 = vmatpush.bf16.msra.mxu0 %v350_v39 }
  0x9b   : > { %372 = vmatpush.bf16.msrb.mxu3 %v347_v41 }
  0x9c   : > { %v296_v28 = vpop.f32.mrf.mxu3 }
  0x9e   : > { %927 = vmatmul.msk.bf16.vlgmr.msrb.gmra.mxu3 %vm223_vm1, %v330_v37 }
  0x9f   : > { %v404_v43 = vpop.permute.xlu0 %403  ;;  %v398_v44 = vpop.permute.xlu1 %397 }
  0xa0   : > { %v407_v45 = vsel %vm405_vm4, %v402_v21, %v404_v43  ;;  %v418_v46 = vsel %vm227_vm0, %v404_v43, 0  ;;  %926 = vmatmul.msk.bf16.vlgmr.msrb.gmra.mxu2 %vm223_vm1, %v330_v37  ;;  %v534_v52 = vpop.permute.xlu2 %533 }
  0xa1   : > { %v415_v47 = vsel %vm227_vm0, %v407_v45, 0  ;;  %453 = vmatpush.bf16.msra.mxu3 %v418_v46 }
  0xa2   : > { %440 = vmatpush.bf16.msra.mxu2 %v415_v47 }
  0xa4   : > { %v298_v29 = vpop.f32.mrf.mxu3 }
  0xa5   : > { %924 = vmatmul.msk.bf16.vlgmr.msrb.gmra.mxu0 %vm223_vm1, %v1040_v0  ;;  %925 = vmatmul.msk.bf16.vlgmr.msrb.gmra.mxu1 %vm223_vm1, %v1040_v0 }
  0xa7   : > { %v472_v49 = vpop.permute.xlu0 %471  ;;  %v466_v50 = vpop.permute.xlu1 %465 }
  0xa8   : > { %v486_v51 = vsel %vm227_vm0, %v472_v49, 0  ;;  %v608_v61 = vpop.permute.xlu2 %607 }
  0xa9   : > { %521 = vmatpush.bf16.msrb.mxu2 %v486_v51  ;;  %v622_v9 = vsel %vm227_vm0, %v608_v61, 0 }
  0xae   : > { %931 = vmatmul.msk.bf16.vlgmr.msra.gmra.mxu3 %vm223_vm1, %v398_v44 }
  0xaf   : > { %v470_v53 = vpop.permute.xlu0 %469  ;;  %v536_v54 = vpop.permute.xlu1 %535 }
  0xb0   : > { %v474_v55 = vsel %vm473_vm5, %v468_v42, %v470_v53  ;;  %v475_v56 = vsel %vm473_vm5, %v470_v53, %v472_v49  ;;  %v542_v57 = vsel %vm541_vm6, %v536_v54, %v538_v48  ;;  %930 = vmatmul.msk.bf16.vlgmr.msra.gmra.mxu2 %vm223_vm1, %v398_v44  ;;  %v670_v26 = vpop.permute.xlu2 %669 }
  0xb1   : > { %v480_v58 = vsel %vm227_vm0, %v474_v55, 0  ;;  %v483_v59 = vsel %vm227_vm0, %v475_v56, 0  ;;  %v548_v60 = vsel %vm227_vm0, %v542_v57, 0 }
  0xb2   : > { %508 = vmatpush.bf16.msrb.mxu1 %v483_v59  ;;  %495 = vmatpush.bf16.msrb.mxu0 %v480_v58 }
  0xb3   : > { %563 = vmatpush.bf16.msrb.mxu3 %v548_v60 }
  0xb5   : > { %928 = vmatmul.msk.bf16.vlgmr.msra.gmra.mxu0 %vm223_vm1, %v330_v37  ;;  %929 = vmatmul.msk.bf16.vlgmr.msra.gmra.mxu1 %vm223_vm1, %v398_v44 }
  0xb7   : > { %v604_v62 = vpop.permute.xlu0 %603  ;;  %v606_v63 = vpop.permute.xlu1 %605 }
  0xb8   : > { %v610_v0 = vsel %vm609_vm7, %v604_v62, %v606_v63  ;;  %v611_v1 = vsel %vm609_vm7, %v606_v63, %v608_v61  ;;  %v738_v27 = vpop.permute.xlu2 %737 }
  0xb9   : > { %v616_v2 = vsel %vm227_vm0, %v610_v0, 0  ;;  %v619_v3 = vsel %vm227_vm0, %v611_v1, 0 }
  0xba   : > { %631 = vmatpush.bf16.msra.mxu2 %v616_v2  ;;  %644 = vmatpush.bf16.msra.mxu3 %v619_v3 }
  0xbe   : > { %935 = vmatmul.msk.bf16.vlgmr.msrb.gmra.mxu3 %vm223_vm1, %v534_v52 }
  0xbf   : > { %v602_v4 = vpop.permute.xlu0 %601  ;;  %v540_v5 = vpop.permute.xlu1 %539 }
  0xc0   : > { %v543_v6 = vsel %vm541_vm6, %v538_v48, %v540_v5  ;;  %v554_v7 = vsel %vm227_vm0, %v540_v5, 0  ;;  %934 = vmatmul.msk.bf16.vlgmr.msrb.gmra.mxu2 %vm223_vm1, %v466_v50 }
  0xc1   : > { %v551_v8 = vsel %vm227_vm0, %v543_v6, 0  ;;  %589 = vmatpush.bf16.msra.mxu1 %v554_v7 }
  0xc2   : > { %576 = vmatpush.bf16.msra.mxu0 %v551_v8 }
  0xc5   : > { %932 = vmatmul.msk.bf16.vlgmr.msrb.gmra.mxu0 %vm223_vm1, %v466_v50  ;;  %933 = vmatmul.msk.bf16.vlgmr.msrb.gmra.mxu1 %vm223_vm1, %v466_v50 }
  0xc6   : > { %657 = vmatpush.bf16.msrb.mxu0 %v622_v9 }
  0xc7   : > { %v674_v10 = vpop.permute.xlu0 %673  ;;  %v676_v11 = vpop.permute.xlu1 %675 }
  0xc8   : > { %v679_v12 = vsel %vm677_vm8, %v674_v10, %v676_v11  ;;  %v690_v13 = vsel %vm227_vm0, %v676_v11, 0 }
  0xc9   : > { %v687_v14 = vsel %vm227_vm0, %v679_v12, 0  ;;  %725 = vmatpush.bf16.msrb.mxu3 %v690_v13 }
  0xca   : > { %712 = vmatpush.bf16.msrb.mxu2 %v687_v14 }
  0xce   : > { %939 = vmatmul.msk.bf16.vlgmr.msra.gmra.mxu3 %vm223_vm1, %v602_v4 }
  0xcf   : > { %v672_v15 = vpop.permute.xlu0 %671  ;;  %v744_v16 = vpop.permute.xlu1 %743 }
  0xd0   : > { %v678_v17 = vsel %vm677_vm8, %v672_v15, %v674_v10  ;;  %938 = vmatmul.msk.bf16.vlgmr.msra.gmra.mxu2 %vm223_vm1, %v602_v4  ;;  %v758_v18 = vsel %vm227_vm0, %v744_v16, 0 }
  0xd1   : > { %v684_v19 = vsel %vm227_vm0, %v678_v17, 0  ;;  %793 = vmatpush.bf16.msra.mxu2 %v758_v18 }
  0xd2   : > { %699 = vmatpush.bf16.msrb.mxu1 %v684_v19 }
  0xd5   : > { %936 = vmatmul.msk.bf16.vlgmr.msra.gmra.mxu0 %vm223_vm1, %v534_v52  ;;  %937 = vmatmul.msk.bf16.vlgmr.msra.gmra.mxu1 %vm223_vm1, %v534_v52 }
  0xd7   : > { %v742_v20 = vpop.permute.xlu1 %741  ;;  %v740_v21 = vpop.permute.xlu0 %739 }
  0xd8   : > { %v747_v22 = vsel %vm745_vm9, %v742_v20, %v744_v16  ;;  %v746_v23 = vsel %vm745_vm9, %v740_v21, %v742_v20 }
  0xd9   : > { %v755_v24 = vsel %vm227_vm0, %v747_v22, 0  ;;  %v752_v25 = vsel %vm227_vm0, %v746_v23, 0 }
  0xda   : > { %780 = vmatpush.bf16.msra.mxu1 %v755_v24  ;;  %767 = vmatpush.bf16.msra.mxu0 %v752_v25 }
  0xde   : > { %943 = vmatmul.msk.bf16.vlgmr.msrb.gmra.mxu3 %vm223_vm1, %v670_v26 }
  0xe0   : > { %942 = vmatmul.msk.bf16.vlgmr.msrb.gmra.mxu2 %vm223_vm1, %v670_v26 }
  0xe5   : > { %940 = vmatmul.msk.bf16.vlgmr.msrb.gmra.mxu0 %vm223_vm1, %v602_v4  ;;  %941 = vmatmul.msk.bf16.vlgmr.msrb.gmra.mxu1 %vm223_vm1, %v670_v26 }
  0xf0   : > { %946 = vmatmul.msk.bf16.vlgmr.msra.gmra.mxu2 %vm223_vm1, %v738_v27 }
  0xf5   : > { %944 = vmatmul.msk.bf16.vlgmr.msra.gmra.mxu0 %vm223_vm1, %v738_v27  ;;  %945 = vmatmul.msk.bf16.vlgmr.msra.gmra.mxu1 %vm223_vm1, %v738_v27 }
 0x112   : > { %v246_v30 = vpop.f32.mrf.mxu0  ;;  %v259_v31 = vpop.f32.mrf.mxu1 }
 0x113   : > { %v297_v32 = vadd.f32 %v296_v28, %v246_v30  ;;  %v272_v33 = vpop.f32.mrf.mxu2  ;;  %v810_v28 = vld [vmem:[%s1181_s2] sm:$0x7] }
 0x11a   : > { %v248_v34 = vpop.f32.mrf.mxu0  ;;  %v261_v35 = vpop.f32.mrf.mxu1 }
 0x11b   : > { %v274_v36 = vpop.f32.mrf.mxu2  ;;  %v813_v34 = vperm.slane %v810_v28, 1 }
 0x121   : > { %v374_v37 = vpop.f32.mrf.mxu3 }
 0x122   : > { %v309_v38 = vpop.f32.mrf.mxu0  ;;  %v322_v39 = vpop.f32.mrf.mxu1 }
 0x123   : > { %v310_v40 = vadd.f32 %v309_v38, %v259_v31  ;;  %v323_v41 = vadd.f32 %v322_v39, %v272_v33  ;;  %v361_v42 = vpop.f32.mrf.mxu2  ;;  %v812_v33 = vperm.slane %v810_v28, 0  ;;  %v814_v38 = vperm.slane %v810_v28, 2 }
 0x124   : > { %v391_v43 = vadd.f32 %v361_v42, %v297_v32 }
 0x125   : > { %v392_v44 = vadd.f32 %v374_v37, %v310_v40 }
 0x129   : > { %v376_v45 = vpop.f32.mrf.mxu3 }
 0x12a   : > { %v311_v46 = vpop.f32.mrf.mxu0  ;;  %v324_v47 = vpop.f32.mrf.mxu1 }
 0x12b   : > { %v363_v48 = vpop.f32.mrf.mxu2 }
 0x131   : > { %v455_v49 = vpop.f32.mrf.mxu3 }
 0x132   : > { %v387_v50 = vpop.f32.mrf.mxu0  ;;  %v429_v51 = vpop.f32.mrf.mxu1 }
 0x133   : > { %v442_v52 = vpop.f32.mrf.mxu2  ;;  %v393_v13 = vadd.f32 %v387_v50, %v323_v41  ;;  %v459_v14 = vadd.f32 %v429_v51, %v391_v43 }
 0x134   : > { %v460_v15 = vadd.f32 %v442_v52, %v392_v44 }
 0x135   : > { %v461_v16 = vadd.f32 %v455_v49, %v393_v13 }
 0x139   : > { %v457_v53 = vpop.f32.mrf.mxu3 }
 0x13a   : > { %v389_v54 = vpop.f32.mrf.mxu0  ;;  %v431_v55 = vpop.f32.mrf.mxu1 }
 0x13b   : > { %v444_v56 = vpop.f32.mrf.mxu2 }
 0x141   : > { %v565_v57 = vpop.f32.mrf.mxu3 }
 0x142   : > { %v497_v58 = vpop.f32.mrf.mxu0  ;;  %v510_v59 = vpop.f32.mrf.mxu1 }
 0x143   : > { %v523_v60 = vpop.f32.mrf.mxu2  ;;  %v527_v18 = vadd.f32 %v497_v58, %v459_v14  ;;  %v528_v19 = vadd.f32 %v510_v59, %v460_v15 }
 0x144   : > { %v529_v20 = vadd.f32 %v523_v60, %v461_v16 }
 0x145   : > { %v595_v26 = vadd.f32 %v565_v57, %v527_v18 }
 0x149   : > { %v567_v61 = vpop.f32.mrf.mxu3 }
 0x14a   : > { %v499_v62 = vpop.f32.mrf.mxu0  ;;  %v512_v63 = vpop.f32.mrf.mxu1 }
 0x14b   : > { %v525_v0 = vpop.f32.mrf.mxu2 }
 0x151   : > { %v646_v1 = vpop.f32.mrf.mxu3 }
 0x152   : > { %v578_v2 = vpop.f32.mrf.mxu0  ;;  %v591_v3 = vpop.f32.mrf.mxu1 }
 0x153   : > { %v633_v4 = vpop.f32.mrf.mxu2  ;;  %v596_v23 = vadd.f32 %v578_v2, %v528_v19  ;;  %v597_v25 = vadd.f32 %v591_v3, %v529_v20 }
 0x154   : > { %v663_v29 = vadd.f32 %v633_v4, %v595_v26 }
 0x155   : > { %v664_v30 = vadd.f32 %v646_v1, %v596_v23 }
 0x159   : > { %v648_v5 = vpop.f32.mrf.mxu3 }
 0x15a   : > { %v580_v6 = vpop.f32.mrf.mxu0  ;;  %v593_v7 = vpop.f32.mrf.mxu1 }
 0x15b   : > { %v635_v8 = vpop.f32.mrf.mxu2 }
 0x161   : > { %v727_v9 = vpop.f32.mrf.mxu3 }
 0x162   : > { %v659_v10 = vpop.f32.mrf.mxu0  ;;  %v701_v11 = vpop.f32.mrf.mxu1 }
 0x163   : > { %v714_v12 = vpop.f32.mrf.mxu2  ;;  %v665_v27 = vadd.f32 %v659_v10, %v597_v25  ;;  %v731_v31 = vadd.f32 %v701_v11, %v663_v29 }
 0x164   : > { %v732_v32 = vadd.f32 %v714_v12, %v664_v30 }
 0x165   : > { %v733_v37 = vadd.f32 %v727_v9, %v665_v27 }
 0x169   : > { %v729_v17 = vpop.f32.mrf.mxu3 }
 0x16a   : > { %v661_v21 = vpop.f32.mrf.mxu0  ;;  %v703_v22 = vpop.f32.mrf.mxu1 }
 0x16b   : > { %v716_v24 = vpop.f32.mrf.mxu2 }
 0x172   : > { %v769_v35 = vpop.f32.mrf.mxu0  ;;  %v782_v36 = vpop.f32.mrf.mxu1 }
 0x173   : > { %v799_v39 = vadd.f32 %v769_v35, %v731_v31  ;;  %v800_v40 = vadd.f32 %v782_v36, %v732_v32  ;;  %v795_v41 = vpop.f32.mrf.mxu2 }
 0x174   : > { %v801_v42 = vadd.f32 %v795_v41, %v733_v37 }
 0x175   : > { %v818_v43 = vmul.f32 %v812_v33, %v799_v39  ;;  %v804_v44 = vrot.slane %v800_v40, 4  ;;  %v819_v45 = vmul.f32 %v813_v34, %v800_v40 }
 0x176   : > { %809 = vst.msk [vmem:[%s195_s22 + $0x8] sm:$0xf] %vm808_vm10, %v801_v42  ;;  %v820_v46 = vmul.f32 %v814_v38, %v801_v42 }
 0x177   : > { %v805_v47 = vsel %vm227_vm0, %v799_v39, %v804_v44  ;;  %824 = sbr.rel (%p947_p4) target bundleno = 382 (0x17e), region = 36 }
 0x178   : > { %807 = vst [vmem:[%s195_s22] sm:$0xff] %v805_v47 }
 0x17a   : > { %v771_v48 = vpop.f32.mrf.mxu0  ;;  %v784_v49 = vpop.f32.mrf.mxu1 }
 0x17b   : > { %v797_v50 = vpop.f32.mrf.mxu2 }
 0x17c   : > { %vm825_vm11 = vcmask 11264   ;;  %v1000_v51 = vmov 0.0  }
 0x17d   : > { %826 = vst.msk [vmem:[%s1183_s4] sm:$0xf] %vm825_vm11, %v1000_v51 }
 0x17e PF: > { %v828_v52 = vsel %vm227_vm0, %v818_v43, 0.0  ;;  %v829_v53 = vsel %vm227_vm0, %v819_v45, 0.0  ;;  %v831_v54 = vsel %vm808_vm10, %v820_v46, 0.0  ;;  %v839_v55 = vmul.f32 %v818_v43, %v799_v39 }
 0x17f   : > { %v830_v56 = vadd.f32 %v829_v53, %v828_v52  ;;  %v840_v57 = vmul.f32 %v819_v45, %v800_v40  ;;  %v841_v58 = vmul.f32 %v820_v46, %v801_v42  ;;  %vm836_vm12 = vcmask 3072  }
 0x180   : > { %v842_v59 = vsel %vm227_vm0, %v839_v55, 0.0  ;;  %vm850_vm13 = vcmask 11272  }
 0x181   : > { %v832_v60 = vadd.f32 %v831_v54, %v830_v56  ;;  %v843_v61 = vsel %vm227_vm0, %v840_v57, 0.0  ;;  %v845_v63 = vsel %vm808_vm10, %v841_v58, 0.0 }
 0x182   : > { %v844_v62 = vadd.f32 %v843_v61, %v842_v59 }
 0x183   : > { %833 = vadd.xlane.f32.xlu0 %v832_v60 }
 0x184   : > { %v846_v0 = vadd.f32 %v845_v63, %v844_v62  ;;  %v827_v1 = vld [vmem:[%s1183_s4] sm:$0xf] }
 0x18b   : > { %847 = vadd.xlane.f32.xlu0 %v846_v0 }
 0x1f6   : > { %v834_v2 = vpop.xlane.xlu0 %833 }
 0x1f7   : > { %v835_v3 = vadd.f32 %v834_v2, %v827_v1 }
 0x1f9   : > { %837 = vst.msk [vmem:[%s1183_s4] sm:$0xf] %vm836_vm12, %v835_v3 }
 0x1fe   : > { %v848_v4 = vpop.xlane.xlu0 %847 }
 0x200   : > { %v838_v5 = vld [vmem:[%s1183_s4] sm:$0xf] }
 0x201   : > { %v849_v6 = vadd.f32 %v848_v4, %v838_v5 }
 0x203   : > { %851 = vst.msk [vmem:[%s1183_s4] sm:$0xf] %vm850_vm13, %v849_v6 }
 0x204 PF: > { %s15_s15 = sadd.s32 1, %s982_s15  }
 0x205   : > { %p12_p5 = scmp.ge.s32.totalorder %s15_s15, 4  }
 0x207   :  { %14 = sbr.rel (!%p12_p5) target bundleno = 1 (0x1), region = 74 }

</bundles_post_ra>
